<compile_context>
chip_gen: v7x
topology: tpu7x:2x2x1
jax: 0.10.0
libtpu: 0.0.40
codegen_flags: <defaults>
</compile_context>

<pallas_src>
import math

import jax
import jax.numpy as jnp
from jax import lax
from jax.experimental import pallas as pl
from jax.experimental.pallas import tpu as pltpu

T_TEMP = 1.0       # softmax temperature (module default)
BN_EPS = 1e-5      # nn.BatchNorm1d default eps
NORM_EPS = 1e-12   # F.normalize default eps

_VMEM = pl.BlockSpec(memory_space=pltpu.MemorySpace.VMEM)
_SMEM = pl.BlockSpec(memory_space=pltpu.MemorySpace.SMEM)


# ----------------------------------------------------------------------------
# Pallas kernels
# ----------------------------------------------------------------------------
def encoder_pool_kernel(vc_ref, w_in_ref, wq_ref, wk_ref, wv_ref, out_ref):
    """BrainNAT stand-in (embed + one full-attention block) fused with mean-pool.

    Grid axis 0 selects the weight set: 0 = base encoder, 1 = momentum encoder.
    vc_ref : (B, L, C)   [voxel value ++ 3D coords], zero-padded to C=8
    w_*    : (1, ...)    weight slice for the current encoder
    out    : (1, B, D)   mean-pooled token features for this encoder
    """
    d = wq_ref.shape[-1]

    vc = vc_ref[...].astype(jnp.bfloat16)          # (B, L, C)
    w_in = w_in_ref[0].astype(jnp.bfloat16)        # (C, D)
    wq = wq_ref[0].astype(jnp.bfloat16)            # (D, D)
    wk = wk_ref[0].astype(jnp.bfloat16)
    wv = wv_ref[0].astype(jnp.bfloat16)

    # embed: (B, L, C) @ (C, D) -> (B, L, D), f32 accumulation
    x = lax.dot_general(vc, w_in, (((2,), (0,)), ((), ())),
                        preferred_element_type=jnp.float32)

    xb = x.astype(jnp.bfloat16)
    q = lax.dot_general(xb, wq, (((2,), (0,)), ((), ())),
                        preferred_element_type=jnp.float32)
    k = lax.dot_general(xb, wk, (((2,), (0,)), ((), ())),
                        preferred_element_type=jnp.float32)
    v = lax.dot_general(xb, wv, (((2,), (0,)), ((), ())),
                        preferred_element_type=jnp.float32)

    # scores 'bqd,bkd->bqk' -- contract last dims directly (no explicit .T)
    s = lax.dot_general(q.astype(jnp.bfloat16), k.astype(jnp.bfloat16),
                        (((2,), (2,)), ((0,), (0,))),
                        preferred_element_type=jnp.float32)
    s = s * (1.0 / math.sqrt(d))
    s_max = jnp.max(s, axis=-1, keepdims=True)
    p = jnp.exp(s - s_max)
    p = p / jnp.sum(p, axis=-1, keepdims=True)

    # 'bqk,bkd->bqd' + residual
    o = lax.dot_general(p.astype(jnp.bfloat16), v.astype(jnp.bfloat16),
                        (((2,), (1,)), ((0,), (0,))),
                        preferred_element_type=jnp.float32) + x

    # fused mean-pool over the token axis (torch.mean(q, dim=1))
    out_ref[0] = jnp.mean(o, axis=1)               # (B, D)


def head_loss_kernel(pooled_ref, w1_ref, gamma_ref, beta_ref, w2_ref, loss_ref):
    """Predictor (Linear->BN->ReLU->Linear) + normalize + contrastive CE.

    pooled_ref : (2, B, D)  [0] = base-encoder pooled (q input), [1] = momentum pooled (k)
    loss_ref   : (1, 1) SMEM scalar = contrastive_loss(q1,k2)+contrastive_loss(q2,k1)
                 (= 2 * contrastive_loss(q, k) since q1==q2 and k1==k2 here).
    """
    q_in = pooled_ref[0]                           # (B, D)
    k = pooled_ref[1]                              # (B, D)

    # predictor: Linear(D,H,no-bias) -> BatchNorm1d(train, biased var) -> ReLU -> Linear(H,D,no-bias)
    h = jnp.dot(q_in.astype(jnp.bfloat16), w1_ref[...].astype(jnp.bfloat16),
                preferred_element_type=jnp.float32)                       # (B, H)
    mean = jnp.mean(h, axis=0, keepdims=True)
    var = jnp.mean((h - mean) ** 2, axis=0, keepdims=True)                # biased, as torch BN
    hn = (h - mean) * lax.rsqrt(var + BN_EPS)
    hn = hn * gamma_ref[...] + beta_ref[...]
    hn = jnp.maximum(hn, 0.0)                                             # ReLU
    q = jnp.dot(hn.astype(jnp.bfloat16), w2_ref[...].astype(jnp.bfloat16),
                preferred_element_type=jnp.float32)                       # (B, D)

    # torch-style F.normalize (eps=1e-12)
    qn = q / jnp.maximum(jnp.sqrt(jnp.sum(q * q, axis=1, keepdims=True)), NORM_EPS)
    kn = k / jnp.maximum(jnp.sqrt(jnp.sum(k * k, axis=1, keepdims=True)), NORM_EPS)

    # logits 'nc,mc->nm' (contract last dims, f32 for the loss), labels = arange(N)
    logits = lax.dot_general(qn, kn, (((1,), (1,)), ((), ())),
                             preferred_element_type=jnp.float32) * (1.0 / T_TEMP)
    n = logits.shape[0]
    m = jnp.max(logits, axis=1, keepdims=True)
    lse = m + jnp.log(jnp.sum(jnp.exp(logits - m), axis=1, keepdims=True))
    rows = lax.broadcasted_iota(jnp.int32, (n, n), 0)
    cols = lax.broadcasted_iota(jnp.int32, (n, n), 1)
    diag = jnp.sum(jnp.where(rows == cols, logits, 0.0), axis=1, keepdims=True)
    ce = jnp.mean(lse - diag) * (2.0 * T_TEMP)

    # q1==q2 and k1==k2 (same inputs & params) => the two reference loss terms are identical.
    loss_ref[0, 0] = 2.0 * ce


# ----------------------------------------------------------------------------
# Wrappers
# ----------------------------------------------------------------------------
def fused_encoder_pool(base_params, momentum_params, v, c):
    """One pallas_call runs both encoders (grid=(2,)) and emits pooled (2, B, D)."""
    b, l, _ = v.shape
    d = base_params["wq"].shape[-1]
    c_in = base_params["w_in"].shape[0]            # 4 = voxel + 3 coords
    c_pad = 8                                      # sublane-aligned embed K

    pad = c_pad - (v.shape[-1] + c.shape[-1])
    vc = jnp.concatenate([v, c, jnp.zeros((b, l, pad), v.dtype)], axis=-1)     # (B, L, 8)

    def pad_w_in(w):
        return jnp.concatenate([w, jnp.zeros((c_pad - c_in, d), w.dtype)], axis=0)

    w_in_s = jnp.stack([pad_w_in(base_params["w_in"]),
                        pad_w_in(momentum_params["w_in"])], axis=0)            # (2, 8, D)
    wq_s = jnp.stack([base_params["wq"], momentum_params["wq"]], axis=0)       # (2, D, D)
    wk_s = jnp.stack([base_params["wk"], momentum_params["wk"]], axis=0)
    wv_s = jnp.stack([base_params["wv"], momentum_params["wv"]], axis=0)

    return pl.pallas_call(
        encoder_pool_kernel,
        out_shape=jax.ShapeDtypeStruct((2, b, d), jnp.float32),
        grid=(2,),
        in_specs=[
            pl.BlockSpec((b, l, c_pad), lambda e: (0, 0, 0)),
            pl.BlockSpec((1, c_pad, d), lambda e: (e, 0, 0)),
            pl.BlockSpec((1, d, d), lambda e: (e, 0, 0)),
            pl.BlockSpec((1, d, d), lambda e: (e, 0, 0)),
            pl.BlockSpec((1, d, d), lambda e: (e, 0, 0)),
        ],
        out_specs=pl.BlockSpec((1, b, d), lambda e: (e, 0, 0)),
        compiler_params=pltpu.CompilerParams(
            dimension_semantics=("parallel",),
            vmem_limit_bytes=32 * 1024 * 1024,
        ),
    )(vc, w_in_s, wq_s, wk_s, wv_s)


def fused_head_loss(pooled, predictor_params):
    """Predictor + normalize + CE in one launch; (1,1) SMEM scalar output."""
    loss = pl.pallas_call(
        head_loss_kernel,
        out_shape=jax.ShapeDtypeStruct((1, 1), jnp.float32),
        in_specs=[_VMEM] * 5,
        out_specs=_SMEM,
        compiler_params=pltpu.CompilerParams(vmem_limit_bytes=32 * 1024 * 1024),
    )(pooled, predictor_params["w1"], predictor_params["gamma"],
      predictor_params["beta"], predictor_params["w2"])
    return loss[0, 0]


@jax.jit
def moco_attention_forward(base_params, momentum_params, predictor_params, v, c, m):
    # momentum update (no-grad parameter EMA) happens before the k branch, as in the reference
    momentum_params = jax.tree_util.tree_map(
        lambda pm, pb: pm * m + pb * (1.0 - m), momentum_params, base_params)

    # single launch: both encoders + mean pool -> (2, B, D)
    pooled = fused_encoder_pool(base_params, momentum_params, v, c)

    # single launch: predictor + normalize + CE; returns the already-summed scalar
    # (reference computes contrastive_loss(q1,k2)+contrastive_loss(q2,k1); with identical
    #  views that is exactly 2 * contrastive_loss(q, k), which the kernel emits).
    return fused_head_loss(pooled, predictor_params)


# ----------------------------------------------------------------------------
# Deterministic parameter init
# ----------------------------------------------------------------------------
def init_params(key, d, h):
    ks = jax.random.split(key, 6)
    scale = 0.02
    enc = {
        "w_in": scale * jax.random.normal(ks[0], (4, d), jnp.float32),
        "wq":   scale * jax.random.normal(ks[1], (d, d), jnp.float32),
        "wk":   scale * jax.random.normal(ks[2], (d, d), jnp.float32),
        "wv":   scale * jax.random.normal(ks[3], (d, d), jnp.float32),
    }
    pred = {
        "w1":    scale * jax.random.normal(ks[4], (d, h), jnp.float32),
        "gamma": jnp.ones((1, h), jnp.float32),   # BN affine init
        "beta":  jnp.zeros((1, h), jnp.float32),
        "w2":    scale * jax.random.normal(ks[5], (h, d), jnp.float32),
    }
    return enc, pred


if __name__ == "__main__":
    B, L, D, H = 2, 16, 192, 256   # small seq length; dim=192 as in the module

    key = jax.random.PRNGKey(0)
    k_v, k_c, k_p = jax.random.split(key, 3)
    v = jax.random.normal(k_v, (B, L, 1), jnp.float32)   # voxel values (in_chans=1)
    c = jax.random.normal(k_c, (B, L, 3), jnp.float32)   # 3D coordinates (coord_dim=3)

    base_params, predictor_params = init_params(k_p, D, H)
    # momentum encoder initialized as an exact copy of the base encoder
    momentum_params = jax.tree_util.tree_map(lambda x: x, base_params)

    loss = moco_attention_forward(base_params, momentum_params, predictor_params,
                                  v, c, jnp.float32(0.99))
    jax.block_until_ready(loss)
    assert loss.shape == () and jnp.isfinite(loss)
    print("KERNEL_OK")
</pallas_src>

<mosaic_0001>
module attributes {stable_mosaic.version = 11 : i64} {
  func.func @encoder_pool_kernel(%arg0: i32, %arg1: memref<2x16x8xf32, #tpu.memory_space<vmem>>, %arg2: memref<1x8x192xf32, #tpu.memory_space<vmem>>, %arg3: memref<1x192x192xf32, #tpu.memory_space<vmem>>, %arg4: memref<1x192x192xf32, #tpu.memory_space<vmem>>, %arg5: memref<1x192x192xf32, #tpu.memory_space<vmem>>, %arg6: memref<1x2x192xf32, #tpu.memory_space<vmem>>) attributes {dimension_semantics = [#tpu.dimension_semantics<parallel>], iteration_bounds = array<i64: 2>, scalar_prefetch = 0 : i64, scratch_operands = 0 : i64, tpu.core_type = #tpu.core_type<tc>, window_params = [{pipeline_mode = #tpu.pipeline_mode<synchronous>, transform_indices = @transform_0, window_bounds = array<i64: 2, 16, 8>}, {transform_indices = @transform_1, window_bounds = array<i64: 1, 8, 192>}, {transform_indices = @transform_2, window_bounds = array<i64: 1, 192, 192>}, {transform_indices = @transform_3, window_bounds = array<i64: 1, 192, 192>}, {transform_indices = @transform_4, window_bounds = array<i64: 1, 192, 192>}, {transform_indices = @transform_5, window_bounds = array<i64: 1, 2, 192>}]} {
    %c0 = arith.constant 0 : index
    %c0_0 = arith.constant 0 : index
    %c0_1 = arith.constant 0 : index
    %0 = vector.load %arg1[%c0, %c0_0, %c0_1] : memref<2x16x8xf32, #tpu.memory_space<vmem>>, vector<2x16x8xf32>
    %1 = arith.truncf %0 : vector<2x16x8xf32> to vector<2x16x8xbf16>
    %c0_2 = arith.constant 0 : index
    %c0_3 = arith.constant 0 : index
    %c0_4 = arith.constant 0 : index
    %2 = vector.load %arg2[%c0_2, %c0_3, %c0_4] : memref<1x8x192xf32, #tpu.memory_space<vmem>>, vector<1x8x192xf32>
    %3 = vector.shape_cast %2 : vector<1x8x192xf32> to vector<8x192xf32>
    %4 = arith.truncf %3 : vector<8x192xf32> to vector<8x192xbf16>
    %c0_5 = arith.constant 0 : index
    %c0_6 = arith.constant 0 : index
    %c0_7 = arith.constant 0 : index
    %5 = vector.load %arg3[%c0_5, %c0_6, %c0_7] : memref<1x192x192xf32, #tpu.memory_space<vmem>>, vector<1x192x192xf32>
    %6 = vector.shape_cast %5 : vector<1x192x192xf32> to vector<192x192xf32>
    %7 = arith.truncf %6 : vector<192x192xf32> to vector<192x192xbf16>
    %c0_8 = arith.constant 0 : index
    %c0_9 = arith.constant 0 : index
    %c0_10 = arith.constant 0 : index
    %8 = vector.load %arg4[%c0_8, %c0_9, %c0_10] : memref<1x192x192xf32, #tpu.memory_space<vmem>>, vector<1x192x192xf32>
    %9 = vector.shape_cast %8 : vector<1x192x192xf32> to vector<192x192xf32>
    %10 = arith.truncf %9 : vector<192x192xf32> to vector<192x192xbf16>
    %c0_11 = arith.constant 0 : index
    %c0_12 = arith.constant 0 : index
    %c0_13 = arith.constant 0 : index
    %11 = vector.load %arg5[%c0_11, %c0_12, %c0_13] : memref<1x192x192xf32, #tpu.memory_space<vmem>>, vector<1x192x192xf32>
    %12 = vector.shape_cast %11 : vector<1x192x192xf32> to vector<192x192xf32>
    %13 = arith.truncf %12 : vector<192x192xf32> to vector<192x192xbf16>
    %cst = arith.constant dense<0.000000e+00> : vector<2x16x192xf32>
    %14 = tpu.matmul %1, %4, %cst {dimension_numbers = #tpu.dot_dimension_numbers<[2], [0], [0, 1], [1], [0, 0, 0, 1, 1, 1], [], []>} : vector<2x16x8xbf16>, vector<8x192xbf16>, vector<2x16x192xf32> -> vector<2x16x192xf32>
    %15 = arith.truncf %14 : vector<2x16x192xf32> to vector<2x16x192xbf16>
    %cst_14 = arith.constant dense<0.000000e+00> : vector<2x16x192xf32>
    %16 = tpu.matmul %15, %7, %cst_14 {dimension_numbers = #tpu.dot_dimension_numbers<[2], [0], [0, 1], [1], [0, 0, 0, 1, 1, 1], [], []>} : vector<2x16x192xbf16>, vector<192x192xbf16>, vector<2x16x192xf32> -> vector<2x16x192xf32>
    %cst_15 = arith.constant dense<0.000000e+00> : vector<2x16x192xf32>
    %17 = tpu.matmul %15, %10, %cst_15 {dimension_numbers = #tpu.dot_dimension_numbers<[2], [0], [0, 1], [1], [0, 0, 0, 1, 1, 1], [], []>} : vector<2x16x192xbf16>, vector<192x192xbf16>, vector<2x16x192xf32> -> vector<2x16x192xf32>
    %cst_16 = arith.constant dense<0.000000e+00> : vector<2x16x192xf32>
    %18 = tpu.matmul %15, %13, %cst_16 {dimension_numbers = #tpu.dot_dimension_numbers<[2], [0], [0, 1], [1], [0, 0, 0, 1, 1, 1], [], []>} : vector<2x16x192xbf16>, vector<192x192xbf16>, vector<2x16x192xf32> -> vector<2x16x192xf32>
    %19 = arith.truncf %16 : vector<2x16x192xf32> to vector<2x16x192xbf16>
    %20 = arith.truncf %17 : vector<2x16x192xf32> to vector<2x16x192xbf16>
    %cst_17 = arith.constant dense<0.000000e+00> : vector<2x16x16xf32>
    %21 = tpu.matmul %19, %20, %cst_17 {dimension_numbers = #tpu.dot_dimension_numbers<[2], [2], [1], [1], [0, 0, 0, 1, 1, 1], [0], [0]>} : vector<2x16x192xbf16>, vector<2x16x192xbf16>, vector<2x16x16xf32> -> vector<2x16x16xf32>
    %cst_18 = arith.constant 0.0721687824 : f32
    %22 = vector.broadcast %cst_18 : f32 to vector<2x16x16xf32>
    %23 = arith.mulf %21, %22 : vector<2x16x16xf32>
    %cst_19 = arith.constant dense<0xFF800000> : vector<2x16xf32>
    %24 = vector.multi_reduction <maximumf>, %23, %cst_19 [2] : vector<2x16x16xf32> to vector<2x16xf32>
    %25 = vector.shape_cast %24 : vector<2x16xf32> to vector<2x16x1xf32>
    %26 = vector.broadcast %25 : vector<2x16x1xf32> to vector<2x16x16xf32>
    %27 = arith.subf %23, %26 : vector<2x16x16xf32>
    %28 = math.exp %27 : vector<2x16x16xf32>
    %cst_20 = arith.constant dense<0.000000e+00> : vector<2x16xf32>
    %29 = vector.multi_reduction <add>, %28, %cst_20 [2] : vector<2x16x16xf32> to vector<2x16xf32>
    %30 = vector.shape_cast %29 : vector<2x16xf32> to vector<2x16x1xf32>
    %31 = vector.broadcast %30 : vector<2x16x1xf32> to vector<2x16x16xf32>
    %32 = arith.divf %28, %31 : vector<2x16x16xf32>
    %33 = arith.truncf %32 : vector<2x16x16xf32> to vector<2x16x16xbf16>
    %34 = arith.truncf %18 : vector<2x16x192xf32> to vector<2x16x192xbf16>
    %cst_21 = arith.constant dense<0.000000e+00> : vector<2x16x192xf32>
    %35 = tpu.matmul %33, %34, %cst_21 {dimension_numbers = #tpu.dot_dimension_numbers<[2], [1], [1], [2], [0, 0, 0, 1, 1, 2], [0], [0]>} : vector<2x16x16xbf16>, vector<2x16x192xbf16>, vector<2x16x192xf32> -> vector<2x16x192xf32>
    %36 = arith.addf %35, %14 : vector<2x16x192xf32>
    %cst_22 = arith.constant dense<0.000000e+00> : vector<2x192xf32>
    %37 = vector.multi_reduction <add>, %36, %cst_22 [1] : vector<2x16x192xf32> to vector<2x192xf32>
    %cst_23 = arith.constant 1.600000e+01 : f32
    %38 = vector.broadcast %cst_23 : f32 to vector<2x192xf32>
    %39 = arith.divf %37, %38 : vector<2x192xf32>
    %c0_24 = arith.constant 0 : index
    %c0_25 = arith.constant 0 : index
    %c0_26 = arith.constant 0 : index
    %40 = vector.load %arg6[%c0_24, %c0_25, %c0_26] : memref<1x2x192xf32, #tpu.memory_space<vmem>>, vector<1x2x192xf32>
    %41 = vector.shape_cast %40 : vector<1x2x192xf32> to vector<2x192xf32>
    %42 = vector.shape_cast %39 : vector<2x192xf32> to vector<1x2x192xf32>
    tpu.vector_store %arg6[%c0_24, %c0_25, %c0_26], %42 {strides = array<i32>} : memref<1x2x192xf32, #tpu.memory_space<vmem>>, vector<1x2x192xf32>,
    return
  }
  func.func @transform_0(%arg0: i32) -> (i32, i32, i32) {
    %c0_i32 = arith.constant 0 : i32
    %c0_i32_0 = arith.constant 0 : i32
    %c0_i32_1 = arith.constant 0 : i32
    %c0_i32_2 = arith.constant 0 : i32
    return %c0_i32, %c0_i32_0, %c0_i32_1 : i32, i32, i32
  }
  func.func @transform_1(%arg0: i32) -> (i32, i32, i32) {
    %c0_i32 = arith.constant 0 : i32
    %c0_i32_0 = arith.constant 0 : i32
    %c0_i32_1 = arith.constant 0 : i32
    return %arg0, %c0_i32, %c0_i32_0 : i32, i32, i32
  }
  func.func @transform_2(%arg0: i32) -> (i32, i32, i32) {
    %c0_i32 = arith.constant 0 : i32
    %c0_i32_0 = arith.constant 0 : i32
    %c0_i32_1 = arith.constant 0 : i32
    return %arg0, %c0_i32, %c0_i32_0 : i32, i32, i32
  }
  func.func @transform_3(%arg0: i32) -> (i32, i32, i32) {
    %c0_i32 = arith.constant 0 : i32
    %c0_i32_0 = arith.constant 0 : i32
    %c0_i32_1 = arith.constant 0 : i32
    return %arg0, %c0_i32, %c0_i32_0 : i32, i32, i32
  }
  func.func @transform_4(%arg0: i32) -> (i32, i32, i32) {
    %c0_i32 = arith.constant 0 : i32
    %c0_i32_0 = arith.constant 0 : i32
    %c0_i32_1 = arith.constant 0 : i32
    return %arg0, %c0_i32, %c0_i32_0 : i32, i32, i32
  }
  func.func @transform_5(%arg0: i32) -> (i32, i32, i32) {
    %c0_i32 = arith.constant 0 : i32
    %c0_i32_0 = arith.constant 0 : i32
    %c0_i32_1 = arith.constant 0 : i32
    return %arg0, %c0_i32, %c0_i32_0 : i32, i32, i32
  }
}

module attributes {stable_mosaic.version = 11 : i64} {
  func.func @head_loss_kernel(%arg0: memref<2x2x192xf32, #tpu.memory_space<vmem>>, %arg1: memref<192x256xf32, #tpu.memory_space<vmem>>, %arg2: memref<1x256xf32, #tpu.memory_space<vmem>>, %arg3: memref<1x256xf32, #tpu.memory_space<vmem>>, %arg4: memref<256x192xf32, #tpu.memory_space<vmem>>, %arg5: memref<1x1xf32, #tpu.memory_space<smem>>) attributes {dimension_semantics = [], scalar_prefetch = 0 : i64, scratch_operands = 0 : i64, tpu.core_type = #tpu.core_type<tc>} {
    %c0 = arith.constant 0 : index
    %c0_0 = arith.constant 0 : index
    %c0_1 = arith.constant 0 : index
    %0 = vector.load %arg0[%c0, %c0_0, %c0_1] : memref<2x2x192xf32, #tpu.memory_space<vmem>>, vector<1x2x192xf32>
    %1 = vector.shape_cast %0 : vector<1x2x192xf32> to vector<2x192xf32>
    %c1 = arith.constant 1 : index
    %c0_2 = arith.constant 0 : index
    %c0_3 = arith.constant 0 : index
    %2 = vector.load %arg0[%c1, %c0_2, %c0_3] : memref<2x2x192xf32, #tpu.memory_space<vmem>>, vector<1x2x192xf32>
    %3 = vector.shape_cast %2 : vector<1x2x192xf32> to vector<2x192xf32>
    %4 = arith.truncf %1 : vector<2x192xf32> to vector<2x192xbf16>
    %c0_4 = arith.constant 0 : index
    %c0_5 = arith.constant 0 : index
    %5 = vector.load %arg1[%c0_4, %c0_5] : memref<192x256xf32, #tpu.memory_space<vmem>>, vector<192x256xf32>
    %6 = arith.truncf %5 : vector<192x256xf32> to vector<192x256xbf16>
    %cst = arith.constant dense<0.000000e+00> : vector<2x256xf32>
    %7 = tpu.matmul %4, %6, %cst {dimension_numbers = #tpu.dot_dimension_numbers<[1], [0], [0], [1], [0, 0, 1, 1], [], []>} : vector<2x192xbf16>, vector<192x256xbf16>, vector<2x256xf32> -> vector<2x256xf32>
    %cst_6 = arith.constant dense<0.000000e+00> : vector<256xf32>
    %8 = vector.multi_reduction <add>, %7, %cst_6 [0] : vector<2x256xf32> to vector<256xf32>
    %9 = vector.shape_cast %8 : vector<256xf32> to vector<1x256xf32>
    %cst_7 = arith.constant 2.000000e+00 : f32
    %10 = vector.broadcast %cst_7 : f32 to vector<1x256xf32>
    %11 = arith.divf %9, %10 : vector<1x256xf32>
    %12 = vector.broadcast %11 : vector<1x256xf32> to vector<2x256xf32>
    %13 = arith.subf %7, %12 : vector<2x256xf32>
    %14 = arith.mulf %13, %13 : vector<2x256xf32>
    %cst_8 = arith.constant dense<0.000000e+00> : vector<256xf32>
    %15 = vector.multi_reduction <add>, %14, %cst_8 [0] : vector<2x256xf32> to vector<256xf32>
    %16 = vector.shape_cast %15 : vector<256xf32> to vector<1x256xf32>
    %cst_9 = arith.constant 2.000000e+00 : f32
    %17 = vector.broadcast %cst_9 : f32 to vector<1x256xf32>
    %18 = arith.divf %16, %17 : vector<1x256xf32>
    %19 = vector.broadcast %11 : vector<1x256xf32> to vector<2x256xf32>
    %20 = arith.subf %7, %19 : vector<2x256xf32>
    %cst_10 = arith.constant 9.99999974E-6 : f32
    %21 = vector.broadcast %cst_10 : f32 to vector<1x256xf32>
    %22 = arith.addf %18, %21 : vector<1x256xf32>
    %23 = math.rsqrt %22 : vector<1x256xf32>
    %24 = vector.broadcast %23 : vector<1x256xf32> to vector<2x256xf32>
    %25 = arith.mulf %20, %24 : vector<2x256xf32>
    %c0_11 = arith.constant 0 : index
    %c0_12 = arith.constant 0 : index
    %26 = vector.load %arg2[%c0_11, %c0_12] : memref<1x256xf32, #tpu.memory_space<vmem>>, vector<1x256xf32>
    %27 = vector.broadcast %26 : vector<1x256xf32> to vector<2x256xf32>
    %28 = arith.mulf %25, %27 : vector<2x256xf32>
    %c0_13 = arith.constant 0 : index
    %c0_14 = arith.constant 0 : index
    %29 = vector.load %arg3[%c0_13, %c0_14] : memref<1x256xf32, #tpu.memory_space<vmem>>, vector<1x256xf32>
    %30 = vector.broadcast %29 : vector<1x256xf32> to vector<2x256xf32>
    %31 = arith.addf %28, %30 : vector<2x256xf32>
    %cst_15 = arith.constant 0.000000e+00 : f32
    %32 = vector.broadcast %cst_15 : f32 to vector<2x256xf32>
    %33 = arith.maximumf %31, %32 : vector<2x256xf32>
    %34 = arith.truncf %33 : vector<2x256xf32> to vector<2x256xbf16>
    %c0_16 = arith.constant 0 : index
    %c0_17 = arith.constant 0 : index
    %35 = vector.load %arg4[%c0_16, %c0_17] : memref<256x192xf32, #tpu.memory_space<vmem>>, vector<256x192xf32>
    %36 = arith.truncf %35 : vector<256x192xf32> to vector<256x192xbf16>
    %cst_18 = arith.constant dense<0.000000e+00> : vector<2x192xf32>
    %37 = tpu.matmul %34, %36, %cst_18 {dimension_numbers = #tpu.dot_dimension_numbers<[1], [0], [0], [1], [0, 0, 1, 1], [], []>} : vector<2x256xbf16>, vector<256x192xbf16>, vector<2x192xf32> -> vector<2x192xf32>
    %38 = arith.mulf %37, %37 : vector<2x192xf32>
    %cst_19 = arith.constant dense<0.000000e+00> : vector<2xf32>
    %39 = vector.multi_reduction <add>, %38, %cst_19 [1] : vector<2x192xf32> to vector<2xf32>
    %40 = vector.shape_cast %39 : vector<2xf32> to vector<2x1xf32>
    %41 = math.sqrt %40 : vector<2x1xf32>
    %cst_20 = arith.constant 9.99999996E-13 : f32
    %42 = vector.broadcast %cst_20 : f32 to vector<2x1xf32>
    %43 = arith.maximumf %41, %42 : vector<2x1xf32>
    %44 = vector.broadcast %43 : vector<2x1xf32> to vector<2x192xf32>
    %45 = arith.divf %37, %44 : vector<2x192xf32>
    %46 = arith.mulf %3, %3 : vector<2x192xf32>
    %cst_21 = arith.constant dense<0.000000e+00> : vector<2xf32>
    %47 = vector.multi_reduction <add>, %46, %cst_21 [1] : vector<2x192xf32> to vector<2xf32>
    %48 = vector.shape_cast %47 : vector<2xf32> to vector<2x1xf32>
    %49 = math.sqrt %48 : vector<2x1xf32>
    %cst_22 = arith.constant 9.99999996E-13 : f32
    %50 = vector.broadcast %cst_22 : f32 to vector<2x1xf32>
    %51 = arith.maximumf %49, %50 : vector<2x1xf32>
    %52 = vector.broadcast %51 : vector<2x1xf32> to vector<2x192xf32>
    %53 = arith.divf %3, %52 : vector<2x192xf32>
    %cst_23 = arith.constant dense<0.000000e+00> : vector<2x2xf32>
    %54 = tpu.matmul %45, %53, %cst_23 {dimension_numbers = #tpu.dot_dimension_numbers<[1], [1], [0], [0], [0, 0, 1, 0], [], []>} : vector<2x192xf32>, vector<2x192xf32>, vector<2x2xf32> -> vector<2x2xf32>
    %cst_24 = arith.constant 1.000000e+00 : f32
    %55 = vector.broadcast %cst_24 : f32 to vector<2x2xf32>
    %56 = arith.mulf %54, %55 : vector<2x2xf32>
    %cst_25 = arith.constant dense<0xFF800000> : vector<2xf32>
    %57 = vector.multi_reduction <maximumf>, %56, %cst_25 [1] : vector<2x2xf32> to vector<2xf32>
    %58 = vector.shape_cast %57 : vector<2xf32> to vector<2x1xf32>
    %59 = vector.broadcast %58 : vector<2x1xf32> to vector<2x2xf32>
    %60 = arith.subf %56, %59 : vector<2x2xf32>
    %61 = math.exp %60 : vector<2x2xf32>
    %cst_26 = arith.constant dense<0.000000e+00> : vector<2xf32>
    %62 = vector.multi_reduction <add>, %61, %cst_26 [1] : vector<2x2xf32> to vector<2xf32>
    %63 = vector.shape_cast %62 : vector<2xf32> to vector<2x1xf32>
    %64 = math.log %63 : vector<2x1xf32>
    %65 = arith.addf %58, %64 : vector<2x1xf32>
    %66 = tpu.iota {dimensions = array<i32: 0>} : vector<2x2xi32>
    %67 = tpu.iota {dimensions = array<i32: 1>} : vector<2x2xi32>
    %68 = arith.cmpi eq, %66, %67 : vector<2x2xi32>
    %cst_27 = arith.constant 0.000000e+00 : f32
    %69 = vector.broadcast %cst_27 : f32 to vector<2x2xf32>
    %70 = arith.select %68, %56, %69 : vector<2x2xi1>, vector<2x2xf32>
    %cst_28 = arith.constant dense<0.000000e+00> : vector<2xf32>
    %71 = vector.multi_reduction <add>, %70, %cst_28 [1] : vector<2x2xf32> to vector<2xf32>
    %72 = vector.shape_cast %71 : vector<2xf32> to vector<2x1xf32>
    %73 = arith.subf %65, %72 : vector<2x1xf32>
    %74 = vector.shape_cast %73 : vector<2x1xf32> to vector<1x2x1xf32>
    %cst_29 = arith.constant dense<0.000000e+00> : vector<1xf32>
    %75 = vector.multi_reduction <add>, %74, %cst_29 [1, 2] : vector<1x2x1xf32> to vector<1xf32>
    %76 = vector.shape_cast %75 : vector<1xf32> to vector<1x1x1xf32>
    %77 = vector.extract %76[0, 0, 0] : f32 from vector<1x1x1xf32>
    %cst_30 = arith.constant 2.000000e+00 : f32
    %78 = arith.divf %77, %cst_30 : f32
    %cst_31 = arith.constant 2.000000e+00 : f32
    %79 = arith.mulf %78, %cst_31 : f32
    %cst_32 = arith.constant 2.000000e+00 : f32
    %80 = arith.mulf %cst_32, %79 : f32
    %c0_33 = arith.constant 0 : index
    %c0_34 = arith.constant 0 : index
    %81 = memref.load %arg5[%c0_33, %c0_34] : memref<1x1xf32, #tpu.memory_space<smem>>
    memref.store %80, %arg5[%c0_33, %c0_34] : memref<1x1xf32, #tpu.memory_space<smem>>
    return
  }
}

</mosaic_0001>

<bundles_post_ra>
// kernel: moco_attention_forward.2
= control target key start
LH: loop header
LB: loop body
LE: loop exit
PB: predicated region body
PF: predicated region fallthrough
CT: control target
= control target key end

     0   :  { %s1262_s18 = smov 0   ;;  %s1546_s0 = inlined_call_operand.vmem [shape: f32[2,16,8], index: 0, kind: input, shape index: {}]   ;;  %s1547_s1 = inlined_call_operand.vmem [shape: f32[2,8,192], index: 1, kind: input, shape index: {}]   ;;  %s1548_s2 = inlined_call_operand.vmem [shape: f32[2,192,192], index: 2, kind: input, shape index: {}]   ;;  %s1549_s3 = inlined_call_operand.vmem [shape: f32[2,192,192], index: 3, kind: input, shape index: {}]   ;;  %s1550_s4 = inlined_call_operand.vmem [shape: f32[2,192,192], index: 4, kind: input, shape index: {}]   ;;  %s1551_s5 = inlined_call_operand.vmem [shape: f32[2,2,192], index: 5, kind: output, shape index: {}]  }
   0x1 LB: > { %s1164_s19 = sadd.s32 4294967295, %s1228_s18   ;;  %p1168_p0 = scmp.ge.s32.totalorder %s1228_s18, 1  ;;  %s1228_s18 = sphi %s1262_s18, %s15_s18  }
   0x2   : > { %p217_p1 = scmp.lt.s32.totalorder %s1228_s18, 3 }
   0x4   : > { %p218_p2 = pnand %p1168_p0, %p217_p1 }
   0x5   : > { %p260_p3 = scmp.lt.s32.totalorder (!%p218_p2), %s1164_s19, 1  ;;  %v1230_v0 = vmov (!%p218_p2), 0   ;;  %v286_v1 = vld [vmem:[%s1546_s0] sm:$0xff] (!%p218_p2)  ;;  %vm519_vm0 = vcmask (!%p218_p2), 1043456   ;;  %v287_v4 = vld [vmem:[%s1546_s0 + $0x8] sm:$0xff] (!%p218_p2)  ;;  %vm512_vm1 = vcmask (!%p218_p2), 64512  }
   0x6   : > { %221 = sbr.rel (%p218_p2) target bundleno = 1253 (0x4e5), region = 40  ;;  %558 = vmatprep.mubr.bf16.mxu0 (!%p218_p2), %v1230_v0  ;;  %v290_v15 = vpack.c.bf16 (!%p218_p2), %v287_v4, %v286_v1  ;;  %v288_v30 = vld [vmem:[%s1546_s0 + $0x10] sm:$0xff] (!%p218_p2)  ;;  %v289_v31 = vld [vmem:[%s1546_s0 + $0x18] sm:$0xff] (!%p218_p2)  ;;  %vm583_vm2 = vcmask (!%p218_p2), 523264   ;;  %vm855_vm3 = vcmask (!%p218_p2), 130048   ;;  %vm1060_vm4 = vcmask (!%p218_p2), 1041409  }
   0x7   : > { %v291_v53 = vpack.c.bf16 (!%p218_p2), %v289_v31, %v288_v30  ;;  %vm1062_vm5 = vcmask (!%p218_p2), 1043459   ;;  %vm1069_vm6 = vcmask (!%p218_p2), 1041408   ;;  %vm1070_vm7 = vcmask (!%p218_p2), 519170  }
   0x8   : > { %vm1064_vm8 = vcmask (!%p218_p2), 1045509   ;;  %vm1066_vm9 = vcmask (!%p218_p2), 1047559   ;;  %vm1071_vm10 = vmor (!%p218_p2), %vm1070_vm7, %vm1069_vm6 }
   0xd   : > { %s1553_s19 = smov (!%p260_p3, %s1164_s19), 1 }
   0xe   : > { %s1193_s20 = sshll.u32 %s1553_s19, 4  ;;  %s1275_s21 = smul.u32 384, %s1553_s19 }
   0xf   : > { %s264_s24 = scalar_lea.vmem %s1547_s1, %s1193_s20  ;;  %s1194_s17 = sshll.u32 %s1553_s19, 2 }
  0x10   : > { %s1287_s29 = scalar_lea.vmem %s1548_s2, %s1275_s21  ;;  %s1293_s7 = scalar_lea.vmem %s1549_s3, %s1275_s21  ;;  %v293_v2 = vld [vmem:[%s264_s24 + $0x8] sm:$0xff]  ;;  %v292_v3 = vld [vmem:[%s264_s24] sm:$0xff] }
  0x11   : > { %v295_v5 = vpack.c.bf16 %v293_v2, %v293_v2  ;;  %v294_v6 = vpack.c.bf16 %v292_v3, %v292_v3  ;;  %v297_v7 = vld [vmem:[%s1287_s29 + $0x8] sm:$0xff]  ;;  %v299_v8 = vld [vmem:[%s1287_s29 + $0x18] sm:$0xff]  ;;  %v296_v9 = vld [vmem:[%s1287_s29] sm:$0xff]  ;;  %s1401_s16 = scalar_lea.vmem %s1550_s4, %s1275_s21  ;;  %s284_s22 = scalar_lea.vmem %s1551_s5, %s1194_s17 }
  0x12   : > { %v345_v10 = vpack.c.bf16 %v299_v8, %v297_v7  ;;  %v298_v11 = vld [vmem:[%s1287_s29 + $0x10] sm:$0xff]  ;;  %v369_v12 = vld [vmem:[%s1293_s7 + $0x8] sm:$0xff]  ;;  %v371_v13 = vld [vmem:[%s1293_s7 + $0x18] sm:$0xff] }
  0x13   : > { %1176 = vmatprep.subr.msk.bf16.mxu0 %vm519_vm0, %v295_v5  ;;  %v521_v14 = vsel %vm519_vm0, %v294_v6, 0  ;;  %v344_v16 = vpack.c.bf16 %v298_v11, %v296_v9  ;;  %v417_v17 = vpack.c.bf16 %v371_v13, %v369_v12  ;;  %v368_v18 = vld [vmem:[%s1293_s7] sm:$0xff]  ;;  %v370_v19 = vld [vmem:[%s1293_s7 + $0x10] sm:$0xff]  ;;  %v301_v20 = vld [vmem:[%s1287_s29 + $0x28] sm:$0xff] }
  0x14   : > { %527 = vmatpush1.bf16.msra.mxu0 %v521_v14  ;;  %590 = vmatprep.subr.bf16.mxu1 %v345_v10  ;;  %v416_v21 = vpack.c.bf16 %v370_v19, %v368_v18  ;;  %v303_v22 = vld [vmem:[%s1287_s29 + $0x38] sm:$0xff]  ;;  %v300_v23 = vld [vmem:[%s1287_s29 + $0x20] sm:$0xff]  ;;  %v302_v24 = vld [vmem:[%s1287_s29 + $0x30] sm:$0xff] }
  0x15   : > { %591 = vmatpush1.bf16.msra.mxu1 %v344_v16  ;;  %643 = vmatprep.subr.bf16.mxu0 %v417_v17  ;;  %v347_v25 = vpack.c.bf16 %v303_v22, %v301_v20  ;;  %v346_v26 = vpack.c.bf16 %v302_v24, %v300_v23  ;;  %v373_v27 = vld [vmem:[%s1293_s7 + $0x28] sm:$0xff]  ;;  %v375_v28 = vld [vmem:[%s1293_s7 + $0x38] sm:$0xff]  ;;  %v372_v29 = vld [vmem:[%s1293_s7 + $0x20] sm:$0xff] }
  0x16   : > { %v419_v32 = vpack.c.bf16 %v375_v28, %v373_v27  ;;  %v374_v33 = vld [vmem:[%s1293_s7 + $0x30] sm:$0xff]  ;;  %v305_v34 = vld [vmem:[%s1287_s29 + $0x48] sm:$0xff]  ;;  %v307_v35 = vld [vmem:[%s1287_s29 + $0x58] sm:$0xff] }
  0x17   : > { %1177 = vmatmul.mubr.msk.bf16.vlgmr.msra.gmra.mrb[0].mxu0 %vm512_vm1, %v290_v15  ;;  %592 = vmatprep.subr.bf16.mxu1 %v347_v25  ;;  %v349_v36 = vpack.c.bf16 %v307_v35, %v305_v34  ;;  %v304_v37 = vld [vmem:[%s1287_s29 + $0x40] sm:$0xff]  ;;  %v306_v38 = vld [vmem:[%s1287_s29 + $0x50] sm:$0xff]  ;;  %v377_v39 = vld [vmem:[%s1293_s7 + $0x48] sm:$0xff]  ;;  %v418_v40 = vpack.c.bf16 %v374_v33, %v372_v29 }
  0x18   : > { %568 = vmatprep.mubr.bf16.mxu0 %v1230_v0  ;;  %644 = vmatpush1.bf16.msra.mxu0 %v416_v21  ;;  %v379_v41 = vld [vmem:[%s1293_s7 + $0x58] sm:$0xff]  ;;  %v376_v42 = vld [vmem:[%s1293_s7 + $0x40] sm:$0xff]  ;;  %v378_v43 = vld [vmem:[%s1293_s7 + $0x50] sm:$0xff]  ;;  %v348_v44 = vpack.c.bf16 %v306_v38, %v304_v37 }
  0x19   : > { %593 = vmatpush1.bf16.msra.mxu1 %v346_v26  ;;  %645 = vmatprep.subr.bf16.mxu0 %v419_v32  ;;  %v421_v45 = vpack.c.bf16 %v379_v41, %v377_v39  ;;  %v309_v46 = vld [vmem:[%s1287_s29 + $0x68] sm:$0xff]  ;;  %v311_v47 = vld [vmem:[%s1287_s29 + $0x78] sm:$0xff]  ;;  %v308_v48 = vld [vmem:[%s1287_s29 + $0x60] sm:$0xff]  ;;  %v420_v55 = vpack.c.bf16 %v378_v43, %v376_v42 }
  0x1a   : > { %594 = vmatprep.subr.bf16.mxu1 %v349_v36  ;;  %v351_v49 = vpack.c.bf16 %v311_v47, %v309_v46  ;;  %v310_v50 = vld [vmem:[%s1287_s29 + $0x70] sm:$0xff]  ;;  %v381_v51 = vld [vmem:[%s1293_s7 + $0x68] sm:$0xff]  ;;  %v383_v52 = vld [vmem:[%s1293_s7 + $0x78] sm:$0xff] }
  0x1b   : > { %v313_v54 = vld [vmem:[%s1287_s29 + $0x88] sm:$0xff]  ;;  %v315_v56 = vld [vmem:[%s1287_s29 + $0x98] sm:$0xff]  ;;  %v350_v57 = vpack.c.bf16 %v310_v50, %v308_v48  ;;  %v423_v58 = vpack.c.bf16 %v383_v52, %v381_v51  ;;  %v380_v59 = vld [vmem:[%s1293_s7 + $0x60] sm:$0xff] }
  0x1c   : > { %646 = vmatpush1.bf16.msra.mxu0 %v418_v40  ;;  %v382_v60 = vld [vmem:[%s1293_s7 + $0x70] sm:$0xff]  ;;  %v312_v61 = vld [vmem:[%s1287_s29 + $0x80] sm:$0xff]  ;;  %v353_v62 = vpack.c.bf16 %v315_v56, %v313_v54  ;;  %v385_v1 = vld [vmem:[%s1293_s7 + $0x88] sm:$0xff] }
  0x1d   : > { %595 = vmatpush1.bf16.msra.mxu1 %v348_v44  ;;  %647 = vmatprep.subr.bf16.mxu0 %v421_v45  ;;  %v314_v63 = vld [vmem:[%s1287_s29 + $0x90] sm:$0xff]  ;;  %v387_v2 = vld [vmem:[%s1293_s7 + $0x98] sm:$0xff]  ;;  %v317_v3 = vld [vmem:[%s1287_s29 + $0xa8] sm:$0xff]  ;;  %v422_v5 = vpack.c.bf16 %v382_v60, %v380_v59 }
  0x1e   : > { %596 = vmatprep.subr.bf16.mxu1 %v351_v49  ;;  %v319_v4 = vld [vmem:[%s1287_s29 + $0xb8] sm:$0xff]  ;;  %v352_v6 = vpack.c.bf16 %v314_v63, %v312_v61  ;;  %v425_v7 = vpack.c.bf16 %v387_v2, %v385_v1  ;;  %v384_v8 = vld [vmem:[%s1293_s7 + $0x80] sm:$0xff]  ;;  %v386_v9 = vld [vmem:[%s1293_s7 + $0x90] sm:$0xff] }
  0x1f   : > { %1178 = vmatmul.mubr.msk.bf16.gmra.mrb[4].mxu0 %vm512_vm1, %v291_v53  ;;  %v316_v10 = vld [vmem:[%s1287_s29 + $0xa0] sm:$0xff]  ;;  %v355_v11 = vpack.c.bf16 %v319_v4, %v317_v3  ;;  %v318_v12 = vld [vmem:[%s1287_s29 + $0xb0] sm:$0xff]  ;;  %v389_v13 = vld [vmem:[%s1293_s7 + $0xa8] sm:$0xff]  ;;  %v424_v17 = vpack.c.bf16 %v386_v9, %v384_v8 }
  0x20   : > { %648 = vmatpush1.bf16.msra.mxu0 %v420_v55  ;;  %v391_v14 = vld [vmem:[%s1293_s7 + $0xb8] sm:$0xff]  ;;  %v321_v15 = vld [vmem:[%s1287_s29 + $0xc8] sm:$0xff]  ;;  %v354_v18 = vpack.c.bf16 %v318_v12, %v316_v10  ;;  %v388_v20 = vld [vmem:[%s1293_s7 + $0xa0] sm:$0xff] }
  0x21   : > { %597 = vmatpush1.bf16.msra.mxu1 %v350_v57  ;;  %649 = vmatprep.subr.bf16.mxu0 %v423_v58  ;;  %v323_v16 = vld [vmem:[%s1287_s29 + $0xd8] sm:$0xff]  ;;  %v427_v19 = vpack.c.bf16 %v391_v14, %v389_v13  ;;  %v390_v21 = vld [vmem:[%s1293_s7 + $0xb0] sm:$0xff]  ;;  %v320_v22 = vld [vmem:[%s1287_s29 + $0xc0] sm:$0xff] }
  0x22   : > { %598 = vmatprep.subr.bf16.mxu1 %v353_v62  ;;  %v357_v23 = vpack.c.bf16 %v323_v16, %v321_v15  ;;  %v322_v24 = vld [vmem:[%s1287_s29 + $0xd0] sm:$0xff]  ;;  %v393_v25 = vld [vmem:[%s1293_s7 + $0xc8] sm:$0xff]  ;;  %v395_v26 = vld [vmem:[%s1293_s7 + $0xd8] sm:$0xff]  ;;  %v426_v29 = vpack.c.bf16 %v390_v21, %v388_v20 }
  0x23   : > { %v325_v27 = vld [vmem:[%s1287_s29 + $0xe8] sm:$0xff]  ;;  %v327_v28 = vld [vmem:[%s1287_s29 + $0xf8] sm:$0xff]  ;;  %v356_v30 = vpack.c.bf16 %v322_v24, %v320_v22  ;;  %v429_v31 = vpack.c.bf16 %v395_v26, %v393_v25  ;;  %v392_v32 = vld [vmem:[%s1293_s7 + $0xc0] sm:$0xff] }
  0x24   : > { %650 = vmatpush1.bf16.msra.mxu0 %v422_v5  ;;  %v394_v33 = vld [vmem:[%s1293_s7 + $0xd0] sm:$0xff]  ;;  %v324_v34 = vld [vmem:[%s1287_s29 + $0xe0] sm:$0xff]  ;;  %v359_v35 = vpack.c.bf16 %v327_v28, %v325_v27  ;;  %v397_v37 = vld [vmem:[%s1293_s7 + $0xe8] sm:$0xff] }
  0x25   : > { %599 = vmatpush1.bf16.msra.mxu1 %v352_v6  ;;  %651 = vmatprep.subr.bf16.mxu0 %v425_v7  ;;  %v326_v36 = vld [vmem:[%s1287_s29 + $0xf0] sm:$0xff]  ;;  %v399_v38 = vld [vmem:[%s1293_s7 + $0xf8] sm:$0xff]  ;;  %v329_v39 = vld [vmem:[%s1287_s29 + $0x108] sm:$0xff]  ;;  %v428_v41 = vpack.c.bf16 %v394_v33, %v392_v32 }
  0x26   : > { %600 = vmatprep.subr.bf16.mxu1 %v355_v11  ;;  %v331_v40 = vld [vmem:[%s1287_s29 + $0x118] sm:$0xff]  ;;  %v358_v42 = vpack.c.bf16 %v326_v36, %v324_v34  ;;  %v431_v43 = vpack.c.bf16 %v399_v38, %v397_v37  ;;  %v396_v44 = vld [vmem:[%s1293_s7 + $0xe0] sm:$0xff]  ;;  %v398_v45 = vld [vmem:[%s1293_s7 + $0xf0] sm:$0xff] }
  0x27   : > { %v328_v46 = vld [vmem:[%s1287_s29 + $0x100] sm:$0xff]  ;;  %v361_v47 = vpack.c.bf16 %v331_v40, %v329_v39  ;;  %v330_v48 = vld [vmem:[%s1287_s29 + $0x110] sm:$0xff]  ;;  %v401_v49 = vld [vmem:[%s1293_s7 + $0x108] sm:$0xff]  ;;  %v430_v53 = vpack.c.bf16 %v398_v45, %v396_v44 }
  0x28   : > { %652 = vmatpush1.bf16.msra.mxu0 %v424_v17  ;;  %v403_v50 = vld [vmem:[%s1293_s7 + $0x118] sm:$0xff]  ;;  %v333_v51 = vld [vmem:[%s1287_s29 + $0x128] sm:$0xff]  ;;  %v360_v54 = vpack.c.bf16 %v330_v48, %v328_v46  ;;  %v400_v56 = vld [vmem:[%s1293_s7 + $0x100] sm:$0xff] }
  0x29   : > { %601 = vmatpush1.bf16.msra.mxu1 %v354_v18  ;;  %653 = vmatprep.subr.bf16.mxu0 %v427_v19  ;;  %v335_v52 = vld [vmem:[%s1287_s29 + $0x138] sm:$0xff]  ;;  %v433_v55 = vpack.c.bf16 %v403_v50, %v401_v49  ;;  %v402_v57 = vld [vmem:[%s1293_s7 + $0x110] sm:$0xff]  ;;  %v332_v58 = vld [vmem:[%s1287_s29 + $0x120] sm:$0xff] }
  0x2a   : > { %602 = vmatprep.subr.bf16.mxu1 %v357_v23  ;;  %v363_v59 = vpack.c.bf16 %v335_v52, %v333_v51  ;;  %v334_v60 = vld [vmem:[%s1287_s29 + $0x130] sm:$0xff]  ;;  %v405_v61 = vld [vmem:[%s1293_s7 + $0x128] sm:$0xff]  ;;  %v407_v62 = vld [vmem:[%s1293_s7 + $0x138] sm:$0xff]  ;;  %v432_v2 = vpack.c.bf16 %v402_v57, %v400_v56 }
  0x2b   : > { %v337_v63 = vld [vmem:[%s1287_s29 + $0x148] sm:$0xff]  ;;  %v339_v1 = vld [vmem:[%s1287_s29 + $0x158] sm:$0xff]  ;;  %v362_v3 = vpack.c.bf16 %v334_v60, %v332_v58  ;;  %v435_v4 = vpack.c.bf16 %v407_v62, %v405_v61  ;;  %v404_v5 = vld [vmem:[%s1293_s7 + $0x120] sm:$0xff] }
  0x2c   : > { %654 = vmatpush1.bf16.msra.mxu0 %v426_v29  ;;  %v406_v6 = vld [vmem:[%s1293_s7 + $0x130] sm:$0xff]  ;;  %v336_v7 = vld [vmem:[%s1287_s29 + $0x140] sm:$0xff]  ;;  %v365_v8 = vpack.c.bf16 %v339_v1, %v337_v63  ;;  %v409_v10 = vld [vmem:[%s1293_s7 + $0x148] sm:$0xff] }
  0x2d   : > { %603 = vmatpush1.bf16.msra.mxu1 %v356_v30  ;;  %655 = vmatprep.subr.bf16.mxu0 %v429_v31  ;;  %v338_v9 = vld [vmem:[%s1287_s29 + $0x150] sm:$0xff]  ;;  %v411_v11 = vld [vmem:[%s1293_s7 + $0x158] sm:$0xff]  ;;  %v434_v12 = vpack.c.bf16 %v406_v6, %v404_v5  ;;  %v408_v15 = vld [vmem:[%s1293_s7 + $0x140] sm:$0xff] }
  0x2e   : > { %604 = vmatprep.subr.bf16.mxu1 %v359_v35  ;;  %v364_v13 = vpack.c.bf16 %v338_v9, %v336_v7  ;;  %v437_v14 = vpack.c.bf16 %v411_v11, %v409_v10  ;;  %v410_v16 = vld [vmem:[%s1293_s7 + $0x150] sm:$0xff]  ;;  %v341_v18 = vld [vmem:[%s1287_s29 + $0x168] sm:$0xff]  ;;  %v343_v19 = vld [vmem:[%s1287_s29 + $0x178] sm:$0xff] }
  0x2f   : > { %v436_v17 = vpack.c.bf16 %v410_v16, %v408_v15  ;;  %v367_v20 = vpack.c.bf16 %v343_v19, %v341_v18  ;;  %v340_v21 = vld [vmem:[%s1287_s29 + $0x160] sm:$0xff]  ;;  %v342_v22 = vld [vmem:[%s1287_s29 + $0x170] sm:$0xff]  ;;  %v413_v23 = vld [vmem:[%s1293_s7 + $0x168] sm:$0xff] }
  0x30   : > { %656 = vmatpush1.bf16.msra.mxu0 %v428_v41  ;;  %v366_v24 = vpack.c.bf16 %v342_v22, %v340_v21  ;;  %v415_v25 = vld [vmem:[%s1293_s7 + $0x178] sm:$0xff]  ;;  %v412_v26 = vld [vmem:[%s1293_s7 + $0x160] sm:$0xff]  ;;  %v414_v27 = vld [vmem:[%s1293_s7 + $0x170] sm:$0xff] }
  0x31   : > { %605 = vmatpush1.bf16.msra.mxu1 %v358_v42  ;;  %657 = vmatprep.subr.bf16.mxu0 %v431_v43  ;;  %v439_v28 = vpack.c.bf16 %v415_v25, %v413_v23  ;;  %v438_v29 = vpack.c.bf16 %v414_v27, %v412_v26  ;;  %v441_v30 = vld [vmem:[%s1401_s16 + $0x8] sm:$0xff]  ;;  %v443_v31 = vld [vmem:[%s1401_s16 + $0x18] sm:$0xff]  ;;  %v440_v35 = vld [vmem:[%s1401_s16] sm:$0xff] }
  0x32   : > { %606 = vmatprep.subr.bf16.mxu1 %v361_v47  ;;  %v489_v32 = vpack.c.bf16 %v443_v31, %v441_v30  ;;  %v442_v36 = vld [vmem:[%s1401_s16 + $0x10] sm:$0xff]  ;;  %v445_v38 = vld [vmem:[%s1401_s16 + $0x28] sm:$0xff]  ;;  %v447_v39 = vld [vmem:[%s1401_s16 + $0x38] sm:$0xff] }
  0x33   : > { %v488_v43 = vpack.c.bf16 %v442_v36, %v440_v35  ;;  %v491_v44 = vpack.c.bf16 %v447_v39, %v445_v38  ;;  %v444_v45 = vld [vmem:[%s1401_s16 + $0x20] sm:$0xff]  ;;  %v446_v46 = vld [vmem:[%s1401_s16 + $0x30] sm:$0xff]  ;;  %v449_v47 = vld [vmem:[%s1401_s16 + $0x48] sm:$0xff] }
  0x34   : > { %658 = vmatpush1.bf16.msra.mxu0 %v430_v53  ;;  %v451_v48 = vld [vmem:[%s1401_s16 + $0x58] sm:$0xff]  ;;  %v490_v50 = vpack.c.bf16 %v446_v46, %v444_v45  ;;  %v448_v53 = vld [vmem:[%s1401_s16 + $0x40] sm:$0xff]  ;;  %v453_v56 = vld [vmem:[%s1401_s16 + $0x68] sm:$0xff] }
  0x35   : > { %607 = vmatpush1.bf16.msra.mxu1 %v360_v54  ;;  %659 = vmatprep.subr.bf16.mxu0 %v433_v55  ;;  %v493_v52 = vpack.c.bf16 %v451_v48, %v449_v47  ;;  %v450_v54 = vld [vmem:[%s1401_s16 + $0x50] sm:$0xff]  ;;  %v455_v57 = vld [vmem:[%s1401_s16 + $0x78] sm:$0xff]  ;;  %v452_v63 = vld [vmem:[%s1401_s16 + $0x60] sm:$0xff] }
  0x36   : > { %608 = vmatprep.subr.bf16.mxu1 %v363_v59  ;;  %v492_v61 = vpack.c.bf16 %v450_v54, %v448_v53  ;;  %v495_v62 = vpack.c.bf16 %v455_v57, %v453_v56  ;;  %v454_v1 = vld [vmem:[%s1401_s16 + $0x70] sm:$0xff]  ;;  %v456_v6 = vld [vmem:[%s1401_s16 + $0x80] sm:$0xff]  ;;  %v463_v9 = vld [vmem:[%s1401_s16 + $0xb8] sm:$0xff] }
  0x37   : > { %v458_v7 = vld [vmem:[%s1401_s16 + $0x90] sm:$0xff]  ;;  %v467_v15 = vld [vmem:[%s1401_s16 + $0xd8] sm:$0xff]  ;;  %v464_v18 = vld [vmem:[%s1401_s16 + $0xc0] sm:$0xff] }
  0x38   : > { %660 = vmatpush1.bf16.msra.mxu0 %v432_v2  ;;  %v457_v2 = vld [vmem:[%s1401_s16 + $0x88] sm:$0xff]  ;;  %v496_v10 = vpack.c.bf16 %v458_v7, %v456_v6  ;;  %v466_v19 = vld [vmem:[%s1401_s16 + $0xd0] sm:$0xff]  ;;  %v471_v21 = vld [vmem:[%s1401_s16 + $0xf8] sm:$0xff] }
  0x39   : > { %609 = vmatpush1.bf16.msra.mxu1 %v362_v3  ;;  %661 = vmatprep.subr.bf16.mxu0 %v435_v4  ;;  %v459_v3 = vld [vmem:[%s1401_s16 + $0x98] sm:$0xff]  ;;  %v494_v4 = vpack.c.bf16 %v454_v1, %v452_v63  ;;  %v500_v22 = vpack.c.bf16 %v466_v19, %v464_v18  ;;  %v470_v25 = vld [vmem:[%s1401_s16 + $0xf0] sm:$0xff]  ;;  %v473_v26 = vld [vmem:[%s1401_s16 + $0x108] sm:$0xff] }
  0x3a   : > { %610 = vmatprep.subr.bf16.mxu1 %v365_v8  ;;  %v497_v5 = vpack.c.bf16 %v459_v3, %v457_v2  ;;  %v461_v8 = vld [vmem:[%s1401_s16 + $0xa8] sm:$0xff]  ;;  %v475_v27 = vld [vmem:[%s1401_s16 + $0x118] sm:$0xff]  ;;  %v472_v30 = vld [vmem:[%s1401_s16 + $0x100] sm:$0xff] }
  0x3b   : > { %v499_v11 = vpack.c.bf16 %v463_v9, %v461_v8  ;;  %v474_v31 = vld [vmem:[%s1401_s16 + $0x110] sm:$0xff]  ;;  %v479_v35 = vld [vmem:[%s1401_s16 + $0x138] sm:$0xff]  ;;  %v476_v39 = vld [vmem:[%s1401_s16 + $0x120] sm:$0xff] }
  0x3c   : > { %662 = vmatpush1.bf16.msra.mxu0 %v434_v12  ;;  %v460_v12 = vld [vmem:[%s1401_s16 + $0xa0] sm:$0xff]  ;;  %v504_v36 = vpack.c.bf16 %v474_v31, %v472_v30  ;;  %v482_v48 = vld [vmem:[%s1401_s16 + $0x150] sm:$0xff] }
  0x3d   : > { %611 = vmatpush1.bf16.msra.mxu1 %v364_v13  ;;  %663 = vmatprep.subr.bf16.mxu0 %v437_v14  ;;  %v462_v13 = vld [vmem:[%s1401_s16 + $0xb0] sm:$0xff]  ;;  %v465_v14 = vld [vmem:[%s1401_s16 + $0xc8] sm:$0xff]  ;;  %v480_v47 = vld [vmem:[%s1401_s16 + $0x140] sm:$0xff] }
  0x3e   : > { %612 = vmatprep.subr.bf16.mxu1 %v367_v20  ;;  %v498_v16 = vpack.c.bf16 %v462_v13, %v460_v12  ;;  %v469_v20 = vld [vmem:[%s1401_s16 + $0xe8] sm:$0xff]  ;;  %v508_v53 = vpack.c.bf16 %v482_v48, %v480_v47  ;;  %v484_v56 = vld [vmem:[%s1401_s16 + $0x160] sm:$0xff]  ;;  %v486_v57 = vld [vmem:[%s1401_s16 + $0x170] sm:$0xff] }
  0x3f   : > { %v503_v23 = vpack.c.bf16 %v471_v21, %v469_v20 }
  0x40   : > { %664 = vmatpush1.bf16.msra.mxu0 %v436_v17  ;;  %v501_v17 = vpack.c.bf16 %v467_v15, %v465_v14 }
  0x41   : > { %613 = vmatpush1.bf16.msra.mxu1 %v366_v24  ;;  %665 = vmatprep.subr.bf16.mxu0 %v439_v28  ;;  %v468_v24 = vld [vmem:[%s1401_s16 + $0xe0] sm:$0xff] }
  0x42   : > { %696 = vmatprep.subr.bf16.mxu1 %v489_v32  ;;  %v502_v28 = vpack.c.bf16 %v470_v25, %v468_v24  ;;  %v477_v32 = vld [vmem:[%s1401_s16 + $0x128] sm:$0xff] }
  0x43   : > { %v507_v38 = vpack.c.bf16 %v479_v35, %v477_v32 }
  0x44   : > { %666 = vmatpush1.bf16.msra.mxu0 %v438_v29  ;;  %v505_v29 = vpack.c.bf16 %v475_v27, %v473_v26 }
  0xea   : > { %v1411_v33 = vpop.f32.mrb[0].mxu0 }
  0xeb   : > { %v1413_v34 = vpop.f32.mrb[1].mxu0 }
  0xec   : > { %v1417_v37 = vpop.f32.mrb[2].mxu0 }
  0xed   : > { %v1423_v40 = vpack.c.bf16 %v1417_v37, %v1411_v33  ;;  %v1425_v41 = vpop.f32.mrb[3].mxu0 }
  0xee   : > { %v580_v42 = vpack.c.bf16 %v1425_v41, %v1413_v34 }
  0xf0   : > { %1179 = vmatprep.mubr.msk.bf16.mxu1 %vm583_vm2, %v580_v42  ;;  %1181 = vmatprep.mubr.msk.bf16.mxu0 %vm583_vm2, %v580_v42 }
  0xf1   : > { %623 = vmatmul.mubr.bf16.vlgmr.msra.gmra.mrb[0].mxu1 %v1423_v40  ;;  %676 = vmatmul.mubr.bf16.vlgmr.msra.gmra.mrb[8].mxu0 %v1423_v40 }
  0xf2   : > { %697 = vmatpush1.bf16.msra.mxu1 %v488_v43  ;;  %v1437_v49 = vpop.f32.mrb[4].mxu0  ;;  %v481_v43 = vld [vmem:[%s1401_s16 + $0x148] sm:$0xff] }
  0xf3   : > { %v1439_v51 = vpop.f32.mrb[5].mxu0  ;;  %698 = vmatprep.subr.bf16.mxu1 %v491_v44  ;;  %v483_v44 = vld [vmem:[%s1401_s16 + $0x158] sm:$0xff] }
  0xf4   : > { %v1443_v55 = vpop.f32.mrb[6].mxu0  ;;  %v509_v46 = vpack.c.bf16 %v483_v44, %v481_v43 }
  0xf5   : > { %v1449_v58 = vpack.c.bf16 %v1443_v55, %v1437_v49  ;;  %v1451_v59 = vpop.f32.mrb[7].mxu0 }
  0xf6   : > { %v1455_v60 = vpack.c.bf16 %v1451_v59, %v1439_v51  ;;  %699 = vmatpush1.bf16.msra.mxu1 %v490_v50  ;;  %v485_v50 = vld [vmem:[%s1401_s16 + $0x168] sm:$0xff] }
  0xf7   : > { %700 = vmatprep.subr.bf16.mxu1 %v493_v52  ;;  %v487_v52 = vld [vmem:[%s1401_s16 + $0x178] sm:$0xff] }
  0xf8   : > { %1180 = vmatprep.mubr.msk.bf16.mxu1 %vm583_vm2, %v1455_v60  ;;  %1182 = vmatprep.mubr.msk.bf16.mxu0 %vm583_vm2, %v1455_v60  ;;  %v511_v54 = vpack.c.bf16 %v487_v52, %v485_v50 }
  0xf9   : > { %633 = vmatmul.mubr.bf16.gmra.mrb[4].mxu1 %v1449_v58  ;;  %686 = vmatmul.mubr.bf16.gmra.mrb[12].mxu0 %v1449_v58 }
  0xfa   : > { %701 = vmatpush1.bf16.msra.mxu1 %v492_v61  ;;  %1183 = vmatprep.mubr.msk.bf16.mxu1 %vm583_vm2, %v580_v42  ;;  %v478_v42 = vld [vmem:[%s1401_s16 + $0x130] sm:$0xff]  ;;  %v510_v61 = vpack.c.bf16 %v486_v57, %v484_v56 }
  0xfb   : > { %702 = vmatprep.subr.bf16.mxu1 %v495_v62  ;;  %v506_v45 = vpack.c.bf16 %v478_v42, %v476_v39 }
  0xfe   : > { %703 = vmatpush1.bf16.msra.mxu1 %v494_v4 }
  0xff   : > { %704 = vmatprep.subr.bf16.mxu1 %v497_v5 }
 0x102   : > { %705 = vmatpush1.bf16.msra.mxu1 %v496_v10 }
 0x103   : > { %706 = vmatprep.subr.bf16.mxu1 %v499_v11 }
 0x106   : > { %707 = vmatpush1.bf16.msra.mxu1 %v498_v16 }
 0x107   : > { %708 = vmatprep.subr.bf16.mxu1 %v501_v17 }
 0x10a   : > { %709 = vmatpush1.bf16.msra.mxu1 %v500_v22 }
 0x10b   : > { %710 = vmatprep.subr.bf16.mxu1 %v503_v23 }
 0x10e   : > { %711 = vmatpush1.bf16.msra.mxu1 %v502_v28 }
 0x10f   : > { %712 = vmatprep.subr.bf16.mxu1 %v505_v29 }
 0x112   : > { %713 = vmatpush1.bf16.msra.mxu1 %v504_v36 }
 0x113   : > { %714 = vmatprep.subr.bf16.mxu1 %v507_v38 }
 0x116   : > { %715 = vmatpush1.bf16.msra.mxu1 %v506_v45 }
 0x117   : > { %716 = vmatprep.subr.bf16.mxu1 %v509_v46 }
 0x11a   : > { %717 = vmatpush1.bf16.msra.mxu1 %v508_v53 }
 0x11b   : > { %718 = vmatprep.subr.bf16.mxu1 %v511_v54 }
 0x11e   : > { %719 = vmatpush1.bf16.msra.mxu1 %v510_v61 }
 0x121   : > { %729 = vmatmul.mubr.bf16.vlgmr.msra.gmra.mrb[8].mxu1 %v1423_v40 }
 0x122   : > { %1184 = vmatprep.mubr.msk.bf16.mxu1 %vm583_vm2, %v1455_v60 }
 0x129   : > { %739 = vmatmul.mubr.bf16.gmra.mrb[12].mxu1 %v1449_v58 }
 0x1c4   : > { %v624_v62 = vpop.f32.mrb[0].mxu1  ;;  %v677_v63 = vpop.f32.mrb[8].mxu0 }
 0x1c5   : > { %v626_v1 = vpop.f32.mrb[1].mxu1  ;;  %v679_v2 = vpop.f32.mrb[9].mxu0 }
 0x1c6   : > { %v628_v3 = vpop.f32.mrb[2].mxu1  ;;  %v681_v4 = vpop.f32.mrb[10].mxu0 }
 0x1c7   : > { %v749_v5 = vpack.c.bf16 %v628_v3, %v624_v62  ;;  %v753_v6 = vpack.c.bf16 %v681_v4, %v677_v63  ;;  %v630_v7 = vpop.f32.mrb[3].mxu1  ;;  %v683_v8 = vpop.f32.mrb[11].mxu0 }
 0x1c8   : > { %v750_v9 = vpack.c.bf16 %v630_v7, %v626_v1  ;;  %v754_v10 = vpack.c.bf16 %v683_v8, %v679_v2 }
 0x1ca   : > { %1185 = vmatprep.subr.msk.bf16.mxu0 %vm583_vm2, %v754_v10  ;;  %1186 = vmatprep.mubr.msk.bf16.mxu0 %vm583_vm2, %v750_v9 }
 0x1cb   : > { %764 = vmatpush1.bf16.xpose.msra.mxu0 %v753_v6 }
 0x1cc   : > { %v687_v40 = vpop.f32.mrb[12].mxu0  ;;  %v634_v60 = vpop.f32.mrb[4].mxu1 }
 0x1cd   : > { %v689_v58 = vpop.f32.mrb[13].mxu0  ;;  %v636_v11 = vpop.f32.mrb[5].mxu1 }
 0x1ce   : > { %v691_v12 = vpop.f32.mrb[14].mxu0  ;;  %v638_v13 = vpop.f32.mrb[6].mxu1 }
 0x1cf   : > { %v755_v14 = vpack.c.bf16 %v691_v12, %v687_v40  ;;  %v751_v15 = vpack.c.bf16 %v638_v13, %v634_v60  ;;  %v693_v16 = vpop.f32.mrb[15].mxu0  ;;  %v640_v17 = vpop.f32.mrb[7].mxu1 }
 0x1d0   : > { %v756_v18 = vpack.c.bf16 %v693_v16, %v689_v58  ;;  %v752_v19 = vpack.c.bf16 %v640_v17, %v636_v11 }
 0x1d2   : > { %796 = vmatmul.mubr.bf16.vlgmr.msra.gmra.mrb[16].mxu0 %v749_v5  ;;  %1187 = vmatprep.subr.msk.bf16.mxu0 %vm583_vm2, %v756_v18 }
 0x1d3   : > { %811 = vmatpush1.bf16.xpose.msra.mxu0 %v755_v14  ;;  %1188 = vmatprep.mubr.msk.bf16.mxu0 %vm583_vm2, %v752_v19 }
 0x1da   : > { %843 = vmatmul.mubr.bf16.vlgmr.msra.gmra.mrb[20].mxu0 %v751_v15 }
 0x1db   : > { %941 = vmatprep.mubr.bf16.mxu0 %v1230_v0 }
 0x1f4   : > { %v730_v20 = vpop.f32.mrb[8].mxu1 }
 0x1f5   : > { %v732_v21 = vpop.f32.mrb[9].mxu1 }
 0x1f6   : > { %v734_v22 = vpop.f32.mrb[10].mxu1 }
 0x1f7   : > { %v902_v23 = vpack.c.bf16 %v734_v22, %v730_v20  ;;  %v736_v24 = vpop.f32.mrb[11].mxu1 }
 0x1f8   : > { %v903_v25 = vpack.c.bf16 %v736_v24, %v732_v21 }
 0x1fa   : > { %909 = vmatprep.subr.bf16.mxu0 %v903_v25 }
 0x1fb   : > { %910 = vmatpush1.bf16.msra.mxu0 %v902_v23 }
 0x1fc   : > { %v1507_v26 = vpop.f32.mrb[12].mxu1 }
 0x1fd   : > { %v742_v27 = vpop.f32.mrb[13].mxu1 }
 0x1fe   : > { %v1509_v28 = vpop.f32.mrb[14].mxu1 }
 0x1ff   : > { %v904_v29 = vpack.c.bf16 %v1509_v28, %v1507_v26  ;;  %v746_v30 = vpop.f32.mrb[15].mxu1 }
 0x200   : > { %v905_v31 = vpack.c.bf16 %v746_v30, %v742_v27 }
 0x202   : > { %955 = vmatprep.subr.bf16.mxu0 %v905_v31 }
 0x2a5   : > { %v797_v32 = vpop.f32.mrb[16].mxu0 }
 0x2a6   : > { %v851_v35 = vmul.f32 0.07216878, %v797_v32  ;;  %v799_v36 = vpop.f32.mrb[17].mxu0 }
 0x2a7   : > { %v800_v38 = vpop.f32.mrb[18].mxu0 }
 0x2a8   : > { %v852_v39 = vmul.f32 0.07216878, %v800_v38  ;;  %v802_v42 = vpop.f32.mrb[19].mxu0  ;;  %v856_v43 = vsel %vm855_vm3, %v851_v35, -inf }
 0x2a9   : > { %857 = vmax.xlane.f32.xlu0 %v856_v43 }
 0x2aa   : > { %v859_v44 = vsel %vm855_vm3, %v852_v39, -inf }
 0x2ad   : > { %860 = vmax.xlane.f32.xlu0 %v859_v44  ;;  %v844_v45 = vpop.f32.mrb[20].mxu0 }
 0x2ae   : > { %v853_v46 = vmul.f32 0.07216878, %v844_v45  ;;  %v846_v47 = vpop.f32.mrb[21].mxu0 }
 0x2af   : > { %v847_v48 = vpop.f32.mrb[22].mxu0 }
 0x2b0   : > { %v854_v50 = vmul.f32 0.07216878, %v847_v48  ;;  %v849_v52 = vpop.f32.mrb[23].mxu0  ;;  %v862_v53 = vsel %vm855_vm3, %v853_v46, -inf }
 0x2b1   : > { %863 = vmax.xlane.f32.xlu1 %v862_v53 }
 0x2b2   : > { %v865_v54 = vsel %vm855_vm3, %v854_v50, -inf }
 0x2b5   : > { %866 = vmax.xlane.f32.xlu1 %v865_v54 }
 0x336   : > { %v858_v56 = vpop.xlane.xlu0 %857 }
 0x337   : > { %v868_v57 = vsub.f32 %v851_v35, %v858_v56 }
 0x339   : > { %v872_v61 = vmul.f32 1.442695, %v868_v57 }
 0x33a   : > { %v861_v62 = vpop.xlane.xlu0 %860 }
 0x33b   : > { %1206 = vpow2.f32 %v872_v61  ;;  %v869_v63 = vsub.f32 %v852_v39, %v861_v62 }
 0x33d   : > { %v874_v1 = vmul.f32 1.442695, %v869_v63 }
 0x33e   : > { %v864_v2 = vpop.xlane.xlu1 %863 }
 0x33f   : > { %1208 = vpow2.f32 %v874_v1  ;;  %v870_v3 = vsub.f32 %v853_v46, %v864_v2 }
 0x341   : > { %v876_v4 = vmul.f32 1.442695, %v870_v3 }
 0x342   : > { %v867_v5 = vpop.xlane.xlu1 %866 }
 0x343   : > { %1210 = vpow2.f32 %v876_v4  ;;  %v871_v6 = vsub.f32 %v854_v50, %v867_v5 }
 0x345   : > { %v1207_v7 = vpop.eup %1206  ;;  %v878_v8 = vmul.f32 1.442695, %v871_v6 }
 0x346   : > { %v880_v9 = vsel %vm855_vm3, %v1207_v7, 0.0 }
 0x347   : > { %1212 = vpow2.f32 %v878_v8  ;;  %881 = vadd.xlane.f32.xlu0 %v880_v9 }
 0x349   : > { %v1209_v10 = vpop.eup %1208 }
 0x34a   : > { %v883_v40 = vsel %vm855_vm3, %v1209_v10, 0.0 }
 0x34b   : > { %884 = vadd.xlane.f32.xlu1 %v883_v40  ;;  %v1231_v40 = vmov 1983009808  }
 0x34d   : > { %v1211_v60 = vpop.eup %1210 }
 0x34e   : > { %v886_v58 = vsel %vm855_vm3, %v1211_v60, 0.0 }
 0x34f   : > { %887 = vadd.xlane.f32.xlu0 %v886_v58 }
 0x351   : > { %v1213_v11 = vpop.eup %1212 }
 0x352   : > { %v889_v12 = vsel %vm855_vm3, %v1213_v11, 0.0 }
 0x353   : > { %890 = vadd.xlane.f32.xlu1 %v889_v12 }
 0x3d4   : > { %v882_v13 = vpop.xlane.xlu0 %881 }
 0x3d5   : > { %1214 = vrcp.f32 %v882_v13 }
 0x3d8   : > { %v885_v14 = vpop.xlane.xlu1 %884 }
 0x3d9   : > { %1216 = vrcp.f32 %v885_v14 }
 0x3dc   : > { %v888_v15 = vpop.xlane.xlu0 %887 }
 0x3dd   : > { %1218 = vrcp.f32 %v888_v15 }
 0x3df   : > { %v1215_v17 = vpop.eup %1214 }
 0x3e0   : > { %v891_v16 = vpop.xlane.xlu1 %890  ;;  %v893_v19 = vmul.f32 %v1215_v17, %v1207_v7 }
 0x3e1   : > { %1220 = vrcp.f32 %v891_v16 }
 0x3e3   : > { %v1217_v18 = vpop.eup %1216 }
 0x3e4   : > { %v895_v20 = vmul.f32 %v1217_v18, %v1209_v10 }
 0x3e6   : > { %v900_v21 = vpack.c.bf16 %v895_v20, %v893_v19 }
 0x3e7   : > { %v1219_v22 = vpop.eup %1218 }
 0x3e8   : > { %1189 = vmatmul.mubr.msk.bf16.vlgmr.msra.gmra.mrb[24].mxu0 %vm855_vm3, %v900_v21  ;;  %v897_v24 = vmul.f32 %v1219_v22, %v1211_v60  ;;  %v1041_v60 = vunpack.c.l.s4 %v1231_v40 }
 0x3e9   : > { %956 = vmatpush1.bf16.msra.mxu0 %v904_v29  ;;  %987 = vmatprep.mubr.bf16.mxu0 %v1230_v0 }
 0x3ea   : > { %v1042_v16 = vunpack.c.0.s8 %v1041_v60 }
 0x3eb   : > { %v1221_v23 = vpop.eup %1220 }
 0x3ec   : > { %v899_v25 = vmul.f32 %v1221_v23, %v1213_v11  ;;  %v1043_v11 = vlaneseq }
 0x3ee   : > { %v901_v27 = vpack.c.bf16 %v899_v25, %v897_v24  ;;  %v1044_v17 = vshrl.u32 %v1043_v11, 7 }
 0x3f0   : > { %1190 = vmatmul.mubr.msk.bf16.vlgmr.msra.gmra.mrb[28].mxu0 %vm855_vm3, %v901_v27  ;;  %v1045_v21 = vsub.s32 %v1042_v16, %v1044_v17 }
 0x4bb   : > { %v943_v30 = vpop.f32.mrb[24].mxu0 }
 0x4bc   : > { %v944_v31 = vadd.f32 %v943_v30, %v1411_v33  ;;  %v945_v32 = vpop.f32.mrb[25].mxu0 }
 0x4bd   : > { %v946_v35 = vadd.f32 %v945_v32, %v1413_v34  ;;  %v947_v36 = vpop.f32.mrb[26].mxu0 }
 0x4be   : > { %v948_v38 = vadd.f32 %v947_v36, %v1417_v37  ;;  %v949_v39 = vpop.f32.mrb[27].mxu0 }
 0x4bf   : > { %v950_v26 = vadd.f32 %v949_v39, %v1425_v41  ;;  %v1005_v0 = vsel %vm583_vm2, %v946_v35, 0.0 }
 0x4c0   : > { %v998_v28 = vadd.f32 %v948_v38, %v944_v31 }
 0x4c1   : > { %v1006_v29 = vsel %vm583_vm2, %v950_v26, 0.0 }
 0x4c2   : > { %v999_v42 = vrot.slane %v998_v28, 4  ;;  %v1007_v43 = vadd.f32 %v1006_v29, %v1005_v0 }
 0x4c3   : > { %v989_v44 = vpop.f32.mrb[28].mxu0 }
 0x4c4   : > { %v1000_v45 = vadd.f32 %v999_v42, %v998_v28  ;;  %v1008_v46 = vrot.slane %v1007_v43, 4  ;;  %v990_v33 = vadd.f32 %v989_v44, %v1437_v49  ;;  %v991_v47 = vpop.f32.mrb[29].mxu0 }
 0x4c5   : > { %v992_v34 = vadd.f32 %v991_v47, %v1439_v51  ;;  %v993_v48 = vpop.f32.mrb[30].mxu0 }
 0x4c6   : > { %v1001_v37 = vrot.slane %v1000_v45, 2  ;;  %v1009_v50 = vadd.f32 %v1008_v46, %v1007_v43  ;;  %v994_v41 = vadd.f32 %v993_v48, %v1443_v55  ;;  %v995_v52 = vpop.f32.mrb[31].mxu0 }
 0x4c7   : > { %v996_v53 = vadd.f32 %v995_v52, %v1451_v59  ;;  %v1021_v61 = vsel %vm583_vm2, %v992_v34, 0.0 }
 0x4c8   : > { %v1002_v54 = vadd.f32 %v1001_v37, %v1000_v45  ;;  %v1010_v56 = vrot.slane %v1009_v50, 2  ;;  %v1014_v57 = vadd.f32 %v994_v41, %v990_v33 }
 0x4c9   : > { %v1022_v62 = vsel %vm583_vm2, %v996_v53, 0.0 }
 0x4ca   : > { %v1003_v63 = vrot.slane %v1002_v54, 1  ;;  %v1011_v49 = vadd.f32 %v1010_v56, %v1009_v50  ;;  %v1015_v1 = vrot.slane %v1014_v57, 4  ;;  %v1023_v2 = vadd.f32 %v1022_v62, %v1021_v61 }
 0x4cc   : > { %v1004_v51 = vadd.f32 %v1003_v63, %v1002_v54  ;;  %v1012_v3 = vrot.slane %v1011_v49, 1  ;;  %v1016_v4 = vadd.f32 %v1015_v1, %v1014_v57  ;;  %v1024_v5 = vrot.slane %v1023_v2, 4 }
 0x4ce   : > { %v1013_v6 = vadd.f32 %v1012_v3, %v1011_v49  ;;  %v1017_v55 = vrot.slane %v1016_v4, 2  ;;  %v1025_v7 = vadd.f32 %v1024_v5, %v1023_v2  ;;  %v1031_v8 = vmul.f32 0.0625, %v1004_v51 }
 0x4d0   : > { %v1032_v59 = vmul.f32 0.0625, %v1013_v6  ;;  %v1018_v9 = vadd.f32 %v1017_v55, %v1016_v4  ;;  %v1026_v10 = vrot.slane %v1025_v7, 2 }
 0x4d2   : > { %v1039_v58 = vcombine.low %v1031_v8, %v1032_v59  ;;  %v1019_v12 = vrot.slane %v1018_v9, 1  ;;  %v1027_v13 = vadd.f32 %v1026_v10, %v1025_v7 }
 0x4d4   : > { %v1020_v14 = vadd.f32 %v1019_v12, %v1018_v9  ;;  %v1028_v15 = vrot.slane %v1027_v13, 1  ;;  %v1046_v24 = vrot.slane %v1039_v58, %v1045_v21 }
 0x4d6   : > { %v1029_v18 = vadd.f32 %v1028_v15, %v1027_v13  ;;  %v1033_v19 = vmul.f32 0.0625, %v1020_v14 }
 0x4d8   : > { %v1034_v20 = vmul.f32 0.0625, %v1029_v18 }
 0x4da   : > { %v1047_v22 = vcombine.low %v1033_v19, %v1034_v20 }
 0x4dc   : > { %v1054_v23 = vrot.slane %v1047_v22, %v1045_v21 }
 0x4de   : > { %v1059_v25 = vrot.slane %v1054_v23, 7 }
 0x4e0   : > { %v1061_v27 = vsel %vm1060_vm4, %v1059_v25, %v1046_v24 }
 0x4e1   : > { %v1063_v30 = vsel %vm1062_vm5, %v1059_v25, %v1061_v27 }
 0x4e2   : > { %v1065_v31 = vsel %vm1064_vm8, %v1059_v25, %v1063_v30 }
 0x4e3   : > { %v1067_v32 = vsel %vm1066_vm9, %v1059_v25, %v1065_v31 }
 0x4e4   : > { %1072 = vst.msk [vmem:[%s284_s22] sm:$0xf] %vm1071_vm10, %v1067_v32 }
 0x4e5 PF: > { %s15_s18 = sadd.s32 1, %s1228_s18  }
 0x4e6   : > { %p12_p4 = scmp.ge.s32.totalorder %s15_s18, 4  }
 0x4e8   :  { %14 = sbr.rel (!%p12_p4) target bundleno = 1 (0x1), region = 79 }

// kernel: moco_attention_forward.3
= control target key start
LH: loop header
LB: loop body
LE: loop exit
PB: predicated region body
PF: predicated region fallthrough
CT: control target
= control target key end

     0   :  { %s1028_s0 = inlined_call_operand.vmem [shape: f32[2,2,192], index: 0, kind: input, shape index: {}]   ;;  %s1029_s1 = inlined_call_operand.vmem [shape: f32[192,256], index: 1, kind: input, shape index: {}]   ;;  %s1030_s2 = inlined_call_operand.vmem [shape: f32[1,256], index: 2, kind: input, shape index: {}]   ;;  %s1031_s3 = inlined_call_operand.vmem [shape: f32[1,256], index: 3, kind: input, shape index: {}]   ;;  %s1032_s4 = inlined_call_operand.vmem [shape: f32[256,192], index: 4, kind: input, shape index: {}]   ;;  %s1033_s5 = inlined_call_operand.hbm [shape: f32[1,1], index: 5, kind: output, shape index: {}]  }
   0x1   :  { %v39_v0 = vld [vmem:[%s1029_s1 + $0x8] sm:$0xff]  ;;  %v41_v1 = vld [vmem:[%s1029_s1 + $0x18] sm:$0xff]  ;;  %v38_v2 = vld [vmem:[%s1029_s1] sm:$0xff] }
   0x2   :  { %v87_v3 = vpack.c.bf16 %v41_v1, %v39_v0  ;;  %v40_v4 = vld [vmem:[%s1029_s1 + $0x10] sm:$0xff]  ;;  %v43_v5 = vld [vmem:[%s1029_s1 + $0x28] sm:$0xff]  ;;  %v45_v6 = vld [vmem:[%s1029_s1 + $0x38] sm:$0xff] }
   0x3   :  { %v86_v7 = vpack.c.bf16 %v40_v4, %v38_v2  ;;  %v89_v8 = vpack.c.bf16 %v45_v6, %v43_v5  ;;  %v42_v9 = vld [vmem:[%s1029_s1 + $0x20] sm:$0xff]  ;;  %v44_v10 = vld [vmem:[%s1029_s1 + $0x30] sm:$0xff]  ;;  %v47_v11 = vld [vmem:[%s1029_s1 + $0x48] sm:$0xff] }
   0x4   :  { %114 = vmatprep.subr.bf16.mxu0 %v87_v3  ;;  %v49_v12 = vld [vmem:[%s1029_s1 + $0x58] sm:$0xff]  ;;  %v88_v13 = vpack.c.bf16 %v44_v10, %v42_v9  ;;  %v46_v15 = vld [vmem:[%s1029_s1 + $0x40] sm:$0xff]  ;;  %v48_v16 = vld [vmem:[%s1029_s1 + $0x50] sm:$0xff] }
   0x5   :  { %115 = vmatpush1.bf16.msra.mxu0 %v86_v7  ;;  %v91_v14 = vpack.c.bf16 %v49_v12, %v47_v11  ;;  %v51_v17 = vld [vmem:[%s1029_s1 + $0x68] sm:$0xff]  ;;  %v53_v18 = vld [vmem:[%s1029_s1 + $0x78] sm:$0xff]  ;;  %v90_v19 = vpack.c.bf16 %v48_v16, %v46_v15  ;;  %v50_v21 = vld [vmem:[%s1029_s1 + $0x60] sm:$0xff] }
   0x6   :  { %116 = vmatprep.subr.bf16.mxu0 %v89_v8  ;;  %v93_v20 = vpack.c.bf16 %v53_v18, %v51_v17  ;;  %v52_v22 = vld [vmem:[%s1029_s1 + $0x70] sm:$0xff]  ;;  %v55_v23 = vld [vmem:[%s1029_s1 + $0x88] sm:$0xff]  ;;  %v57_v24 = vld [vmem:[%s1029_s1 + $0x98] sm:$0xff] }
   0x7   :  { %v92_v25 = vpack.c.bf16 %v52_v22, %v50_v21  ;;  %v95_v26 = vpack.c.bf16 %v57_v24, %v55_v23  ;;  %v54_v27 = vld [vmem:[%s1029_s1 + $0x80] sm:$0xff]  ;;  %v56_v28 = vld [vmem:[%s1029_s1 + $0x90] sm:$0xff]  ;;  %v59_v29 = vld [vmem:[%s1029_s1 + $0xa8] sm:$0xff] }
   0x8   :  { %v61_v30 = vld [vmem:[%s1029_s1 + $0xb8] sm:$0xff]  ;;  %v58_v31 = vld [vmem:[%s1029_s1 + $0xa0] sm:$0xff]  ;;  %v60_v32 = vld [vmem:[%s1029_s1 + $0xb0] sm:$0xff]  ;;  %v94_v33 = vpack.c.bf16 %v56_v28, %v54_v27 }
   0x9   :  { %117 = vmatpush1.bf16.msra.mxu0 %v88_v13  ;;  %v708_v34 = vld.sshfl [vmem:[%s1028_s0] sm:$0x33 pattern:$0x76325410]  ;;  %v232_v35 = vld [vmem:[%s1032_s4 + $0x8] sm:$0xff]  ;;  %v234_v36 = vld [vmem:[%s1032_s4 + $0x18] sm:$0xff]  ;;  %v97_v37 = vpack.c.bf16 %v61_v30, %v59_v29 }
   0xa   :  { %118 = vmatprep.subr.bf16.mxu0 %v91_v14  ;;  %v33_v38 = vcombine.high %v708_v34, %v708_v34  ;;  %v296_v39 = vpack.c.bf16 %v234_v36, %v232_v35  ;;  %v231_v40 = vld [vmem:[%s1032_s4] sm:$0xff]  ;;  %v233_v41 = vld [vmem:[%s1032_s4 + $0x10] sm:$0xff] }
   0xd   :  { %119 = vmatpush1.bf16.msra.mxu0 %v90_v19 }
   0xe   :  { %120 = vmatprep.subr.bf16.mxu0 %v93_v20 }
  0x11   :  { %121 = vmatpush1.bf16.msra.mxu0 %v92_v25 }
  0x12   :  { %122 = vmatprep.subr.bf16.mxu0 %v95_v26 }
  0x13   :  { %10 = vsyncpa [#allocation3], 0  ;;  %v63_v42 = vld [vmem:[%s1029_s1 + $0xc8] sm:$0xff]  ;;  %v65_v43 = vld [vmem:[%s1029_s1 + $0xd8] sm:$0xff]  ;;  %vm110_vm0 = vcmask 523264   ;;  %v295_v44 = vpack.c.bf16 %v233_v41, %v231_v40  ;;  %v37_v45 = vpack.c.bf16 %v33_v38, %v33_v38  ;;  %327 = vmatprep.subr.bf16.mxu1 %v296_v39  ;;  %v96_v46 = vpack.c.bf16 %v60_v32, %v58_v31  ;;  %s588_s22 = scalar_lea.hbm %s1033_s5, 16 }
  0x14   :  { %v99_v47 = vpack.c.bf16 %v65_v43, %v63_v42  ;;  %v62_v48 = vld [vmem:[%s1029_s1 + $0xc0] sm:$0xff]  ;;  %v64_v49 = vld [vmem:[%s1029_s1 + $0xd0] sm:$0xff]  ;;  %v67_v50 = vld [vmem:[%s1029_s1 + $0xe8] sm:$0xff]  ;;  %v36_v17 = vpack.c.bf16 %v708_v34, %v708_v34  ;;  %vm155_vm1 = vcmask 1041408   ;;  %vm371_vm2 = vcmask 517120   ;;  %p589_p0 = scmp.ne.s32.totalorder %s1033_s5, %s588_s22  ;;  %p592_p1 = scmp.lt.u32.totalorder %s588_s22, %s1033_s5 }
  0x15   :  { %123 = vmatpush1.bf16.msra.mxu0 %v94_v33  ;;  %328 = vmatpush1.bf16.msra.mxu1 %v295_v44  ;;  %v69_v51 = vld [vmem:[%s1029_s1 + $0xf8] sm:$0xff]  ;;  %v98_v52 = vpack.c.bf16 %v64_v49, %v62_v48  ;;  %v66_v54 = vld [vmem:[%s1029_s1 + $0xe0] sm:$0xff]  ;;  %v68_v55 = vld [vmem:[%s1029_s1 + $0xf0] sm:$0xff]  ;;  %vm508_vm7 = vcmask 9216   ;;  %vm531_vm9 = vcmask 1024  }
  0x16   :  { %124 = vmatprep.subr.bf16.mxu0 %v97_v37  ;;  %564 = vmatprep.mubr.msk.bf16.mxu0 %vm110_vm0, %v37_v45  ;;  %v101_v53 = vpack.c.bf16 %v69_v51, %v67_v50  ;;  %v71_v56 = vld [vmem:[%s1029_s1 + $0x108] sm:$0xff]  ;;  %v73_v57 = vld [vmem:[%s1029_s1 + $0x118] sm:$0xff]  ;;  %v100_v58 = vpack.c.bf16 %v68_v55, %v66_v54  ;;  %v70_v60 = vld [vmem:[%s1029_s1 + $0x100] sm:$0xff]  ;;  %p594_p2 = pnand %p592_p1, %p589_p0 }
  0x17   :  { %v103_v59 = vpack.c.bf16 %v73_v57, %v71_v56  ;;  %v72_v61 = vld [vmem:[%s1029_s1 + $0x110] sm:$0xff]  ;;  %v75_v62 = vld [vmem:[%s1029_s1 + $0x128] sm:$0xff]  ;;  %v77_v63 = vld [vmem:[%s1029_s1 + $0x138] sm:$0xff] }
  0x18   :  { %v102_v0 = vpack.c.bf16 %v72_v61, %v70_v60  ;;  %v105_v1 = vpack.c.bf16 %v77_v63, %v75_v62  ;;  %v74_v2 = vld [vmem:[%s1029_s1 + $0x120] sm:$0xff]  ;;  %v76_v3 = vld [vmem:[%s1029_s1 + $0x130] sm:$0xff]  ;;  %v79_v4 = vld [vmem:[%s1029_s1 + $0x148] sm:$0xff] }
  0x19   :  { %125 = vmatpush1.bf16.msra.mxu0 %v96_v46  ;;  %v81_v5 = vld [vmem:[%s1029_s1 + $0x158] sm:$0xff]  ;;  %v104_v6 = vpack.c.bf16 %v76_v3, %v74_v2  ;;  %v78_v8 = vld [vmem:[%s1029_s1 + $0x140] sm:$0xff]  ;;  %v80_v9 = vld [vmem:[%s1029_s1 + $0x150] sm:$0xff] }
  0x1a   :  { %126 = vmatprep.subr.bf16.mxu0 %v99_v47  ;;  %v107_v7 = vpack.c.bf16 %v81_v5, %v79_v4  ;;  %v83_v10 = vld [vmem:[%s1029_s1 + $0x168] sm:$0xff]  ;;  %v85_v11 = vld [vmem:[%s1029_s1 + $0x178] sm:$0xff]  ;;  %v106_v12 = vpack.c.bf16 %v80_v9, %v78_v8  ;;  %v82_v14 = vld [vmem:[%s1029_s1 + $0x160] sm:$0xff] }
  0x1b   :  { %v109_v13 = vpack.c.bf16 %v85_v11, %v83_v10  ;;  %v84_v15 = vld [vmem:[%s1029_s1 + $0x170] sm:$0xff]  ;;  %v236_v18 = vld [vmem:[%s1032_s4 + $0x28] sm:$0xff]  ;;  %v238_v19 = vld [vmem:[%s1032_s4 + $0x38] sm:$0xff] }
  0x1c   :  { %v108_v16 = vpack.c.bf16 %v84_v15, %v82_v14  ;;  %v298_v20 = vpack.c.bf16 %v238_v19, %v236_v18  ;;  %v235_v21 = vld [vmem:[%s1032_s4 + $0x20] sm:$0xff]  ;;  %v237_v22 = vld [vmem:[%s1032_s4 + $0x30] sm:$0xff]  ;;  %v240_v24 = vld [vmem:[%s1032_s4 + $0x48] sm:$0xff] }
  0x1d   :  { %127 = vmatpush1.bf16.msra.mxu0 %v98_v52  ;;  %v297_v23 = vpack.c.bf16 %v237_v22, %v235_v21  ;;  %v242_v25 = vld [vmem:[%s1032_s4 + $0x58] sm:$0xff]  ;;  %v239_v27 = vld [vmem:[%s1032_s4 + $0x40] sm:$0xff]  ;;  %v241_v28 = vld [vmem:[%s1032_s4 + $0x50] sm:$0xff] }
  0x1e   :  { %128 = vmatprep.subr.bf16.mxu0 %v101_v53  ;;  %329 = vmatprep.subr.bf16.mxu1 %v298_v20  ;;  %v300_v26 = vpack.c.bf16 %v242_v25, %v240_v24  ;;  %v299_v29 = vpack.c.bf16 %v241_v28, %v239_v27  ;;  %v244_v30 = vld [vmem:[%s1032_s4 + $0x68] sm:$0xff]  ;;  %v246_v31 = vld [vmem:[%s1032_s4 + $0x78] sm:$0xff]  ;;  %v243_v33 = vld [vmem:[%s1032_s4 + $0x60] sm:$0xff] }
  0x1f   :  { %330 = vmatpush1.bf16.msra.mxu1 %v297_v23  ;;  %v302_v32 = vpack.c.bf16 %v246_v31, %v244_v30  ;;  %v245_v34 = vld [vmem:[%s1032_s4 + $0x70] sm:$0xff]  ;;  %v248_v36 = vld [vmem:[%s1032_s4 + $0x88] sm:$0xff]  ;;  %v250_v37 = vld [vmem:[%s1032_s4 + $0x98] sm:$0xff] }
  0x20   :  { %331 = vmatprep.subr.bf16.mxu1 %v300_v26  ;;  %v301_v35 = vpack.c.bf16 %v245_v34, %v243_v33  ;;  %v304_v38 = vpack.c.bf16 %v250_v37, %v248_v36  ;;  %v247_v39 = vld [vmem:[%s1032_s4 + $0x80] sm:$0xff]  ;;  %v249_v40 = vld [vmem:[%s1032_s4 + $0x90] sm:$0xff]  ;;  %v252_v42 = vld [vmem:[%s1032_s4 + $0xa8] sm:$0xff] }
  0x21   :  { %129 = vmatpush1.bf16.msra.mxu0 %v100_v58  ;;  %v303_v41 = vpack.c.bf16 %v249_v40, %v247_v39  ;;  %v254_v43 = vld [vmem:[%s1032_s4 + $0xb8] sm:$0xff]  ;;  %v251_v45 = vld [vmem:[%s1032_s4 + $0xa0] sm:$0xff]  ;;  %v253_v46 = vld [vmem:[%s1032_s4 + $0xb0] sm:$0xff] }
  0x22   :  { %130 = vmatprep.subr.bf16.mxu0 %v103_v59  ;;  %v306_v44 = vpack.c.bf16 %v254_v43, %v252_v42  ;;  %v305_v47 = vpack.c.bf16 %v253_v46, %v251_v45  ;;  %v256_v48 = vld [vmem:[%s1032_s4 + $0xc8] sm:$0xff]  ;;  %v258_v49 = vld [vmem:[%s1032_s4 + $0xd8] sm:$0xff]  ;;  %v255_v51 = vld [vmem:[%s1032_s4 + $0xc0] sm:$0xff]  ;;  %v600_v46 = vmov 1983009808  }
  0x23   :  { %332 = vmatpush1.bf16.msra.mxu1 %v299_v29  ;;  %v308_v50 = vpack.c.bf16 %v258_v49, %v256_v48  ;;  %v257_v52 = vld [vmem:[%s1032_s4 + $0xd0] sm:$0xff]  ;;  %v260_v54 = vld [vmem:[%s1032_s4 + $0xe8] sm:$0xff]  ;;  %v262_v55 = vld [vmem:[%s1032_s4 + $0xf8] sm:$0xff] }
  0x24   :  { %333 = vmatprep.subr.bf16.mxu1 %v302_v32  ;;  %v307_v53 = vpack.c.bf16 %v257_v52, %v255_v51  ;;  %v310_v56 = vpack.c.bf16 %v262_v55, %v260_v54  ;;  %v259_v57 = vld [vmem:[%s1032_s4 + $0xe0] sm:$0xff]  ;;  %v261_v58 = vld [vmem:[%s1032_s4 + $0xf0] sm:$0xff]  ;;  %v264_v60 = vld [vmem:[%s1032_s4 + $0x108] sm:$0xff] }
  0x25   :  { %131 = vmatpush1.bf16.msra.mxu0 %v102_v0  ;;  %v309_v59 = vpack.c.bf16 %v261_v58, %v259_v57  ;;  %v266_v61 = vld [vmem:[%s1032_s4 + $0x118] sm:$0xff]  ;;  %v263_v63 = vld [vmem:[%s1032_s4 + $0x100] sm:$0xff]  ;;  %v265_v0 = vld [vmem:[%s1032_s4 + $0x110] sm:$0xff] }
  0x26   :  { %132 = vmatprep.subr.bf16.mxu0 %v105_v1  ;;  %v312_v62 = vpack.c.bf16 %v266_v61, %v264_v60  ;;  %v311_v1 = vpack.c.bf16 %v265_v0, %v263_v63  ;;  %v268_v2 = vld [vmem:[%s1032_s4 + $0x128] sm:$0xff]  ;;  %v270_v3 = vld [vmem:[%s1032_s4 + $0x138] sm:$0xff]  ;;  %v267_v5 = vld [vmem:[%s1032_s4 + $0x120] sm:$0xff] }
  0x27   :  { %334 = vmatpush1.bf16.msra.mxu1 %v301_v35  ;;  %v314_v4 = vpack.c.bf16 %v270_v3, %v268_v2  ;;  %v272_v8 = vld [vmem:[%s1032_s4 + $0x148] sm:$0xff]  ;;  %v274_v9 = vld [vmem:[%s1032_s4 + $0x158] sm:$0xff]  ;;  %v271_v11 = vld [vmem:[%s1032_s4 + $0x140] sm:$0xff] }
  0x28   :  { %335 = vmatprep.subr.bf16.mxu1 %v304_v38  ;;  %v316_v10 = vpack.c.bf16 %v274_v9, %v272_v8  ;;  %v276_v14 = vld [vmem:[%s1032_s4 + $0x168] sm:$0xff]  ;;  %v278_v15 = vld [vmem:[%s1032_s4 + $0x178] sm:$0xff]  ;;  %v277_v18 = vld [vmem:[%s1032_s4 + $0x170] sm:$0xff] }
  0x29   :  { %133 = vmatpush1.bf16.msra.mxu0 %v104_v6  ;;  %v269_v6 = vld [vmem:[%s1032_s4 + $0x130] sm:$0xff]  ;;  %v280_v20 = vld [vmem:[%s1032_s4 + $0x188] sm:$0xff]  ;;  %v282_v21 = vld [vmem:[%s1032_s4 + $0x198] sm:$0xff] }
  0x2a   :  { %134 = vmatprep.subr.bf16.mxu0 %v107_v7  ;;  %v313_v7 = vpack.c.bf16 %v269_v6, %v267_v5  ;;  %v320_v22 = vpack.c.bf16 %v282_v21, %v280_v20  ;;  %v279_v23 = vld [vmem:[%s1032_s4 + $0x180] sm:$0xff]  ;;  %v281_v24 = vld [vmem:[%s1032_s4 + $0x190] sm:$0xff]  ;;  %v284_v26 = vld [vmem:[%s1032_s4 + $0x1a8] sm:$0xff] }
  0x2b   :  { %336 = vmatpush1.bf16.msra.mxu1 %v303_v41  ;;  %v319_v25 = vpack.c.bf16 %v281_v24, %v279_v23  ;;  %v286_v27 = vld [vmem:[%s1032_s4 + $0x1b8] sm:$0xff]  ;;  %v283_v29 = vld [vmem:[%s1032_s4 + $0x1a0] sm:$0xff]  ;;  %v285_v30 = vld [vmem:[%s1032_s4 + $0x1b0] sm:$0xff] }
  0x2c   :  { %337 = vmatprep.subr.bf16.mxu1 %v306_v44  ;;  %v322_v28 = vpack.c.bf16 %v286_v27, %v284_v26  ;;  %v321_v31 = vpack.c.bf16 %v285_v30, %v283_v29  ;;  %v288_v32 = vld [vmem:[%s1032_s4 + $0x1c8] sm:$0xff]  ;;  %v290_v33 = vld [vmem:[%s1032_s4 + $0x1d8] sm:$0xff]  ;;  %v287_v35 = vld [vmem:[%s1032_s4 + $0x1c0] sm:$0xff]  ;;  %v201_v44 = vlaneseq }
  0x2d   :  { %135 = vmatpush1.bf16.msra.mxu0 %v106_v12  ;;  %v273_v12 = vld [vmem:[%s1032_s4 + $0x150] sm:$0xff]  ;;  %v324_v34 = vpack.c.bf16 %v290_v33, %v288_v32  ;;  %v292_v37 = vld [vmem:[%s1032_s4 + $0x1e8] sm:$0xff]  ;;  %v294_v39 = vld [vmem:[%s1032_s4 + $0x1f8] sm:$0xff] }
  0x2e   :  { %136 = vmatprep.subr.bf16.mxu0 %v109_v13  ;;  %v315_v13 = vpack.c.bf16 %v273_v12, %v271_v11  ;;  %v289_v36 = vld [vmem:[%s1032_s4 + $0x1d0] sm:$0xff]  ;;  %v291_v40 = vld [vmem:[%s1032_s4 + $0x1e0] sm:$0xff]  ;;  %v326_v42 = vpack.c.bf16 %v294_v39, %v292_v37  ;;  %v985_v48 = vshrl.u32 %v201_v44, 7 }
  0x2f   :  { %338 = vmatpush1.bf16.msra.mxu1 %v305_v47  ;;  %v323_v38 = vpack.c.bf16 %v289_v36, %v287_v35  ;;  %v293_v41 = vld [vmem:[%s1032_s4 + $0x1f0] sm:$0xff]  ;;  %v982_v45 = vld [vmem:[%s1028_s0 + $0x4] sm:$0xf]  ;;  %v390_v47 = vunpack.c.l.s4 %v600_v46  ;;  %v199_v36 = vld [vmem:[%s1030_s2] sm:$0x3] }
  0x30   :  { %339 = vmatprep.subr.bf16.mxu1 %v308_v50  ;;  %v325_v43 = vpack.c.bf16 %v293_v41, %v291_v40  ;;  %v387_v49 = vmul.f32 %v982_v45, %v982_v45  ;;  %v203_v35 = vsub.s32 0, %v985_v48  ;;  %v207_v37 = vsub.s32 1, %v985_v48 }
  0x31   :  { %137 = vmatpush1.bf16.msra.mxu0 %v108_v16  ;;  %v318_v16 = vpack.c.bf16 %v278_v15, %v276_v14  ;;  %v391_v50 = vunpack.c.0.s8 %v390_v47 }
  0x32   :  { %v204_v39 = vrot.slane %v199_v36, %v203_v35  ;;  %v208_v41 = vrot.slane %v199_v36, %v207_v37 }
  0x33   :  { %340 = vmatpush1.bf16.msra.mxu1 %v307_v53  ;;  %v990_v51 = vsub.s32 %v391_v50, %v985_v48 }
  0x34   :  { %147 = vmatmul.mubr.bf16.vlgmr.msra.gmra.mrb[0].mxu0 %v36_v17  ;;  %341 = vmatprep.subr.bf16.mxu1 %v310_v56  ;;  %v275_v17 = vld [vmem:[%s1032_s4 + $0x160] sm:$0xff] }
  0x35   :  { %v317_v19 = vpack.c.bf16 %v277_v18, %v275_v17  ;;  %v395_v52 = vrot.slane %v387_v49, %v990_v51 }
  0x37   :  { %342 = vmatpush1.bf16.msra.mxu1 %v309_v59  ;;  %v396_v53 = vcombine.high %v395_v52, %v395_v52  ;;  %v399_v54 = vsel %vm155_vm1, %v395_v52, 0.0 }
  0x38   :  { %343 = vmatprep.subr.bf16.mxu1 %v312_v62 }
  0x39   :  { %v400_v55 = vsel %vm371_vm2, %v396_v53, 0.0 }
  0x3a   :  { %v401_v56 = vadd.f32 %v400_v55, %v399_v54 }
  0x3b   :  { %344 = vmatpush1.bf16.msra.mxu1 %v311_v1 }
  0x3c   :  { %345 = vmatprep.subr.bf16.mxu1 %v314_v4  ;;  %402 = vadd.xlane.f32.xlu0 %v401_v56 }
  0x3f   :  { %346 = vmatpush1.bf16.msra.mxu1 %v313_v7 }
  0x40   :  { %347 = vmatprep.subr.bf16.mxu1 %v316_v10 }
  0x43   :  { %348 = vmatpush1.bf16.msra.mxu1 %v315_v13 }
  0x44   :  { %349 = vmatprep.subr.bf16.mxu1 %v318_v16 }
  0x47   :  { %350 = vmatpush1.bf16.msra.mxu1 %v317_v19 }
  0x48   :  { %351 = vmatprep.subr.bf16.mxu1 %v320_v22 }
  0x4b   :  { %352 = vmatpush1.bf16.msra.mxu1 %v319_v25 }
  0x4c   :  { %353 = vmatprep.subr.bf16.mxu1 %v322_v28 }
  0x4f   :  { %354 = vmatpush1.bf16.msra.mxu1 %v321_v31 }
  0x50   :  { %355 = vmatprep.subr.bf16.mxu1 %v324_v34 }
  0x53   :  { %356 = vmatpush1.bf16.msra.mxu1 %v323_v38  ;;  %v213_v38 = vld [vmem:[%s1031_s3] sm:$0x3] }
  0x54   :  { %357 = vmatprep.subr.bf16.mxu1 %v326_v42  ;;  %v218_v46 = vrot.slane %v213_v38, %v203_v35  ;;  %v222_v49 = vrot.slane %v213_v38, %v207_v37 }
  0x57   :  { %358 = vmatpush1.bf16.msra.mxu1 %v325_v43 }
 0x107   :  { %v148_v57 = vpop.f32.mrb[0].mxu0 }
 0x108   :  { %v156_v58 = vsel %vm155_vm1, %v148_v57, 0.0  ;;  %v150_v59 = vpop.f32.mrb[1].mxu0 }
 0x109   :  { %v157_v60 = vrot.slane %v156_v58, 4  ;;  %v163_v61 = vsel %vm155_vm1, %v150_v59, 0.0  ;;  %v152_v62 = vpop.f32.mrb[2].mxu0 }
 0x10a   :  { %v164_v63 = vrot.slane %v163_v61, 4  ;;  %v153_v0 = vpop.f32.mrb[3].mxu0  ;;  %v601_v62 = vmov 269488144  }
 0x10b   :  { %v158_v1 = vadd.f32 %v157_v60, %v156_v58 }
 0x10c   :  { %v165_v2 = vadd.f32 %v164_v63, %v163_v61  ;;  %v414_v63 = vunpack.c.l.s4 %v601_v62 }
 0x10d   :  { %v159_v3 = vrot.slane %v158_v1, 2 }
 0x10e   :  { %v166_v4 = vrot.slane %v165_v2, 2 }
 0x10f   :  { %v160_v5 = vadd.f32 %v159_v3, %v158_v1 }
 0x110   :  { %v167_v6 = vadd.f32 %v166_v4, %v165_v2 }
 0x111   :  { %v161_v7 = vrot.slane %v160_v5, 1 }
 0x112   :  { %v168_v8 = vrot.slane %v167_v6, 1 }
 0x113   :  { %v162_v9 = vadd.f32 %v161_v7, %v160_v5  ;;  %v415_v5 = vunpack.c.0.s8 %v414_v63 }
 0x114   :  { %v169_v10 = vadd.f32 %v168_v8, %v167_v6 }
 0x115   :  { %v171_v11 = vmul.f32 0.5, %v162_v9 }
 0x116   :  { %v172_v12 = vmul.f32 0.5, %v169_v10 }
 0x117   :  { %v173_v13 = vsub.f32 %v148_v57, %v171_v11 }
 0x118   :  { %v174_v14 = vsub.f32 %v150_v59, %v172_v12  ;;  %v403_v59 = vpop.xlane.xlu0 %402 }
 0x119   :  { %v175_v15 = vmul.f32 %v173_v13, %v173_v13  ;;  %vm406_vm3 = vcmp.eq.f32.partialorder %v403_v59, inf  ;;  %v409_v0 = vand.u32 2147483648, %v403_v59  ;;  %vm408_vm4 = vcmp.eq.f32.partialorder %v403_v59, 0.0 }
 0x11a   :  { %v176_v16 = vmul.f32 %v174_v14, %v174_v14 }
 0x11b   :  { %v177_v17 = vsel %vm155_vm1, %v175_v15, 0.0 }
 0x11c   :  { %v178_v18 = vrot.slane %v177_v17, 4  ;;  %v184_v19 = vsel %vm155_vm1, %v176_v16, 0.0 }
 0x11d   :  { %v185_v20 = vrot.slane %v184_v19, 4 }
 0x11e   :  { %v179_v21 = vadd.f32 %v178_v18, %v177_v17 }
 0x11f   :  { %v186_v22 = vadd.f32 %v185_v20, %v184_v19 }
 0x120   :  { %v180_v23 = vrot.slane %v179_v21, 2 }
 0x121   :  { %v187_v24 = vrot.slane %v186_v22, 2 }
 0x122   :  { %v181_v25 = vadd.f32 %v180_v23, %v179_v21 }
 0x123   :  { %v188_v26 = vadd.f32 %v187_v24, %v186_v22 }
 0x124   :  { %v182_v27 = vrot.slane %v181_v25, 1 }
 0x125   :  { %v189_v28 = vrot.slane %v188_v26, 1 }
 0x126   :  { %v183_v29 = vadd.f32 %v182_v27, %v181_v25 }
 0x127   :  { %v190_v30 = vadd.f32 %v189_v28, %v188_v26 }
 0x128   :  { %v191_v31 = vmul.f32 0.5, %v183_v29 }
 0x129   :  { %v192_v32 = vmul.f32 0.5, %v190_v30 }
 0x12a   :  { %v193_v33 = vadd.f32 1e-05, %v191_v31 }
 0x12b   :  { %v194_v34 = vadd.f32 1e-05, %v192_v32 }
 0x12c   :  { %572 = vrsqrt.f32 %v193_v33 }
 0x12d   :  { %574 = vrsqrt.f32 %v194_v34 }
 0x12e   :  { %576 = vrsqrt.f32 %v403_v59 }
 0x136   :  { %v573_v40 = vpop.eup %572 }
 0x137   :  { %v575_v42 = vpop.eup %574  ;;  %v197_v43 = vmul.f32 %v573_v40, %v173_v13  ;;  %v418_v13 = vsub.s32 %v415_v5, %v985_v48 }
 0x138   :  { %v198_v47 = vmul.f32 %v575_v42, %v174_v14  ;;  %v577_v60 = vpop.eup %576 }
 0x139   :  { %v211_v50 = vmul.f32 %v204_v39, %v197_v43  ;;  %v405_v61 = vmul.f32 %v577_v60, %v403_v59 }
 0x13a   :  { %v212_v52 = vmul.f32 %v208_v41, %v198_v47 }
 0x13b   :  { %v225_v53 = vadd.f32 %v218_v46, %v211_v50  ;;  %v407_v1 = vsel %vm406_vm3, %v403_v59, %v405_v61 }
 0x13c   :  { %v226_v54 = vadd.f32 %v222_v49, %v212_v52  ;;  %v410_v8 = vsel %vm408_vm4, %v409_v0, %v407_v1 }
 0x13d   :  { %v227_v55 = vmax.f32 %v225_v53, 0.0  ;;  %v411_v14 = vmax.f32 %v410_v8, 1e-12 }
 0x13e   :  { %v228_v56 = vmax.f32 %v226_v54, 0.0 }
 0x13f   :  { %v229_v58 = vpack.c.bf16 %v227_v55, %v227_v55  ;;  %v419_v15 = vrot.slane %v411_v14, %v418_v13 }
 0x140   :  { %v230_v57 = vpack.c.bf16 %v228_v56, %v228_v56 }
 0x141   :  { %578 = vrcp.f32 %v419_v15 }
 0x142   :  { %359 = vmatprep.mubr.bf16.mxu1 %v230_v57 }
 0x143   :  { %360 = vmatmul.mubr.bf16.vlgmr.msra.gmra.mrb[0].mxu1 %v229_v58 }
 0x14b   :  { %v579_v16 = vpop.eup %578 }
 0x14c   :  { %v422_v17 = vmul.f32 %v579_v16, %v982_v45 }
 0x14e   :  { %v430_v18 = vrot.slane %v422_v17, %v990_v51  ;;  %v524_v51 = vand.u32 127, %v201_v44 }
 0x150   :  { %v431_v19 = vcombine.high %v430_v18, %v430_v18  ;;  %vm525_vm8 = vcmp.eq.s32.totalorder %v985_v48, %v524_v51 }
 0x152   :  { %565 = vmatprep.subr.msk.mxu0 %vm110_vm0, %v431_v19 }
 0x153   :  { %439 = vmatpush1.xpose.msra.mxu0 %v430_v18 }
 0x216   :  { %v361_v2 = vpop.f32.mrb[0].mxu1 }
 0x217   :  { %v368_v3 = vmul.f32 %v361_v2, %v361_v2  ;;  %v363_v4 = vpop.f32.mrb[1].mxu1 }
 0x218   :  { %v369_v6 = vmul.f32 %v363_v4, %v363_v4  ;;  %v365_v7 = vpop.f32.mrb[2].mxu1 }
 0x219   :  { %v366_v9 = vpop.f32.mrb[3].mxu1  ;;  %v370_v10 = vsel %vm155_vm1, %v368_v3, 0.0 }
 0x21a   :  { %v372_v11 = vsel %vm371_vm2, %v369_v6, 0.0 }
 0x21b   :  { %v373_v12 = vadd.f32 %v372_v11, %v370_v10 }
 0x21d   :  { %374 = vadd.xlane.f32.xlu0 %v373_v12 }
 0x2aa   :  { %v375_v20 = vpop.xlane.xlu0 %374 }
 0x2ab   :  { %580 = vrsqrt.f32 %v375_v20  ;;  %vm378_vm5 = vcmp.eq.f32.partialorder %v375_v20, inf  ;;  %v381_v23 = vand.u32 2147483648, %v375_v20  ;;  %vm380_vm6 = vcmp.eq.f32.partialorder %v375_v20, 0.0 }
 0x2b5   :  { %v581_v21 = vpop.eup %580 }
 0x2b6   :  { %v377_v22 = vmul.f32 %v581_v21, %v375_v20 }
 0x2b8   :  { %v379_v24 = vsel %vm378_vm5, %v375_v20, %v377_v22 }
 0x2b9   :  { %v382_v25 = vsel %vm380_vm6, %v381_v23, %v379_v24 }
 0x2ba   :  { %v383_v26 = vmax.f32 %v382_v25, 1e-12 }
 0x2bc   :  { %582 = vrcp.f32 %v383_v26 }
 0x2c6   :  { %v583_v27 = vpop.eup %582 }
 0x2c7   :  { %v386_v28 = vmul.f32 %v583_v27, %v363_v4  ;;  %v385_v45 = vmul.f32 %v583_v27, %v361_v2 }
 0x2c9   :  { %566 = vmatprep.mubr.msk.f32.mxu0 %vm110_vm0, %v386_v28 }
 0x2ca   :  { %503 = vmatmul.mubr.f32.vlgmr.msra.gmra.mrb[4].mxu0 %v385_v45 }
 0x39d   :  { %v504_v29 = vpop.f32.mrb[4].mxu0 }
 0x39e   :  { %v506_v30 = vpop.f32.mrb[5].mxu0  ;;  %v509_v31 = vsel %vm508_vm7, %v504_v29, -inf  ;;  %v526_v32 = vsel %vm525_vm8, %v504_v29, 0.0 }
 0x39f   :  { %510 = vmax.xlane.f32.xlu1 %v509_v31  ;;  %v527_v33 = vsel %vm508_vm7, %v526_v32, 0.0 }
 0x3a0   :  { %528 = vadd.xlane.f32.xlu0 %v527_v33 }
 0x42c   :  { %v511_v34 = vpop.xlane.xlu1 %510 }
 0x42d   :  { %v512_v35 = vsub.f32 %v504_v29, %v511_v34  ;;  %v529_v48 = vpop.xlane.xlu0 %528 }
 0x42f   :  { %v513_v36 = vmul.f32 1.442695, %v512_v35 }
 0x431   :  { %584 = vpow2.f32 %v513_v36 }
 0x43b   :  { %v585_v37 = vpop.eup %584 }
 0x43c   :  { %v515_v38 = vsel %vm508_vm7, %v585_v37, 0.0 }
 0x43d   :  { %516 = vadd.xlane.f32.xlu1 %v515_v38 }
 0x4ca   :  { %v517_v39 = vpop.xlane.xlu1 %516 }
 0x4cb   :  { %586 = vlog2.f32 %v517_v39 }
 0x4d5   :  { %v587_v44 = vpop.eup %586 }
 0x4d6   :  { %v519_v40 = vmul.f32 0.6931472, %v587_v44 }
 0x4d8   :  { %v520_v41 = vadd.f32 %v519_v40, %v511_v34 }
 0x4da   :  { %v530_v42 = vsub.f32 %v520_v41, %v529_v48 }
 0x4dc   :  { %v532_v43 = vsel %vm531_vm9, %v530_v42, 0.0 }
 0x4dd   :  { %533 = vadd.xlane.f32.xlu1 %v532_v43 }
 0x56a   :  { %v534_v46 = vpop.xlane.xlu1 %533 }
 0x56b   :  { %v535_v47 = vrot.slane %v534_v46, 4 }
 0x56d   :  { %v536_v49 = vadd.f32 %v535_v47, %v534_v46 }
 0x56f   :  { %v537_v50 = vrot.slane %v536_v49, 2 }
 0x571   :  { %v538_v52 = vadd.f32 %v537_v50, %v536_v49 }
 0x573   :  { %v539_v53 = vrot.slane %v538_v52, 1 }
 0x575   :  { %v540_v54 = vadd.f32 %v539_v53, %v538_v52 }
 0x577   :  { %567 = vpush %v540_v54 }
 0x5a8   :  { %s568_s2 = spop %567 }
 0x5a9   :  { %s544_s3 = smul.f32 0.5, %s568_s2 }
 0x5ab   :  { %s545_s18 = smul.f32 2.0, %s544_s3 }
 0x5ad   :  { %s546_s19 = smul.f32 2.0, %s545_s18 }
 0x5af   :  { %548 = sst [smem:[#allocation2]] %s546_s19 }
 0x5b0   :  { %597 = shalt.err (!%p594_p2)
}
 0x5b1   :  { %s602_s27 = smov [#allocation2]  }
 0x5b2   :  { %556 = dma.smem_to_hbm %s602_s27, 16, %s1033_s5, [#allocation3]  }
 0x5b3   :  { %598 = dma.done.wait [#allocation3], 16  }
 0x5b4   :  { %599 = vsyncadd [#allocation3], 4294967280 }
 0x5b5   :  { %560 = sfence }
 0x5b6   :  { %561 = vsyncpa [#allocation3], 1 }

</bundles_post_ra>
